<compile_context>
chip_gen: v6e
topology: v6e:2x2x1
jax: 0.10.0
libtpu: 0.0.40
codegen_flags: <defaults>
</compile_context>

<pallas_src>
import functools

import jax
import jax.numpy as jnp
import numpy as np
from jax.experimental import pallas as pl
from jax.experimental.pallas import tpu as pltpu

BN_EPS = 1e-5
LANE = 128   # pad K and Cout to multiples of the lane width
TM = 256     # M rows per grid step (small so the tiny demo still has >1 tile;
             # raise to 512-1024 for production shapes, sized against ~32 MiB scoped VMEM)


def _round_up(a, b):
    return (a + b - 1) // b * b


# ---------------------------------------------------------------------------
# Kernel 1: conv-as-matmul + per-tile BN partial statistics (sum, sum of squares)
# ---------------------------------------------------------------------------
def _matmul_stats_kernel(p_ref, w_ref, y_ref, stats_ref):
    # p_ref: (TM, Kp) bf16 patches; w_ref: (Kp, Cp) bf16 weight (resident over the M grid)
    # y_ref: (TM, Cp) f32 conv output; stats_ref: (1, 2, Cp) f32 [sum, sumsq] of this tile
    y = jnp.dot(p_ref[...], w_ref[...], preferred_element_type=jnp.float32)
    y_ref[...] = y
    ssum = jnp.sum(y, axis=0, keepdims=True)        # (1, Cp)
    ssq = jnp.sum(y * y, axis=0, keepdims=True)     # (1, Cp)
    stats_ref[...] = jnp.concatenate([ssum, ssq], axis=0)[None]


def _conv_stats_pallas(p2d, w2d):
    """p2d: (M, K) real patches; w2d: (K, C) real matmul weight.
    Returns (y_padded (Mp, Cp) f32, stats (2, Cp) f32 summed over the real M rows)."""
    M, K = p2d.shape
    _, C = w2d.shape
    Mp, Kp, Cp = _round_up(M, TM), _round_up(K, LANE), _round_up(C, LANE)
    # Zero padding: padded K columns add 0 to the dot; padded M rows give y == 0,
    # so they do not perturb (sum, sumsq).
    p = jnp.pad(p2d.astype(jnp.bfloat16), ((0, Mp - M), (0, Kp - K)))
    w = jnp.pad(w2d.astype(jnp.bfloat16), ((0, Kp - K), (0, Cp - C)))
    nm = Mp // TM

    y, stats = pl.pallas_call(
        _matmul_stats_kernel,
        out_shape=(jax.ShapeDtypeStruct((Mp, Cp), jnp.float32),
                   jax.ShapeDtypeStruct((nm, 2, Cp), jnp.float32)),
        grid_spec=pltpu.PrefetchScalarGridSpec(
            num_scalar_prefetch=0,
            grid=(nm,),
            in_specs=[
                pl.BlockSpec((TM, Kp), lambda m: (m, 0)),
                pl.BlockSpec((Kp, Cp), lambda m: (0, 0)),
            ],
            out_specs=(
                pl.BlockSpec((TM, Cp), lambda m: (m, 0)),
                pl.BlockSpec((1, 2, Cp), lambda m: (m, 0, 0)),
            ),
        ),
        compiler_params=pltpu.CompilerParams(
            dimension_semantics=("parallel",)),
        cost_estimate=pl.CostEstimate(
            flops=2 * Mp * Kp * Cp,
            transcendentals=0,
            bytes_accessed=p.size * 2 + w.size * 2 + Mp * Cp * 4 + nm * 2 * Cp * 4),
    )(p, w)
    return y, jnp.sum(stats, axis=0)


def _bn_scale_shift(stats, real_m, gamma, beta):
    """Fold train-mode BN (biased variance, eps=1e-5) + affine into per-channel
    scale/shift. stats: (2, Cp) [sum, sumsq] over real_m rows; gamma/beta: (C,)."""
    Cp = stats.shape[1]
    mean = stats[0] / real_m
    var = jnp.maximum(stats[1] / real_m - mean * mean, 0.0)
    g = jnp.pad(gamma.astype(jnp.float32), (0, Cp - gamma.shape[0]))
    b = jnp.pad(beta.astype(jnp.float32), (0, Cp - beta.shape[0]))
    scale = g * jax.lax.rsqrt(var + BN_EPS)   # padded channels: gamma=0 -> scale=0
    shift = b - mean * scale
    return scale.reshape(1, Cp), shift.reshape(1, Cp)


# ---------------------------------------------------------------------------
# Kernel 2: per-channel affine (folded BN) + optional ReLU
# ---------------------------------------------------------------------------
def _bn_act_kernel(y_ref, scale_ref, shift_ref, o_ref, *, relu):
    o = y_ref[...] * scale_ref[...] + shift_ref[...]
    if relu:
        o = jnp.maximum(o, 0.0)
    o_ref[...] = o.astype(o_ref.dtype)


def _bn_act_pallas(y, scale, shift, relu, out_dtype):
    Mp, Cp = y.shape
    nm = Mp // TM
    return pl.pallas_call(
        functools.partial(_bn_act_kernel, relu=relu),
        out_shape=jax.ShapeDtypeStruct((Mp, Cp), out_dtype),
        grid_spec=pltpu.PrefetchScalarGridSpec(
            num_scalar_prefetch=0,
            grid=(nm,),
            in_specs=[
                pl.BlockSpec((TM, Cp), lambda m: (m, 0)),
                pl.BlockSpec((1, Cp), lambda m: (0, 0)),
                pl.BlockSpec((1, Cp), lambda m: (0, 0)),
            ],
            out_specs=pl.BlockSpec((TM, Cp), lambda m: (m, 0)),
        ),
        compiler_params=pltpu.CompilerParams(
            dimension_semantics=("parallel",)),
    )(y, scale, shift)


# ---------------------------------------------------------------------------
# Kernel 3: fused BN(block conv3) + BN(identity conv) + residual add + ReLU
# ---------------------------------------------------------------------------
def _bn_add_relu_kernel(ya_ref, yb_ref, sa_ref, ha_ref, sb_ref, hb_ref, o_ref):
    a = ya_ref[...] * sa_ref[...] + ha_ref[...]
    b = yb_ref[...] * sb_ref[...] + hb_ref[...]
    o_ref[...] = jnp.maximum(a + b, 0.0).astype(o_ref.dtype)


def _bn_add_relu_pallas(ya, sa, ha, yb, sb, hb):
    Mp, Cp = ya.shape
    nm = Mp // TM
    return pl.pallas_call(
        _bn_add_relu_kernel,
        out_shape=jax.ShapeDtypeStruct((Mp, Cp), jnp.float32),
        grid_spec=pltpu.PrefetchScalarGridSpec(
            num_scalar_prefetch=0,
            grid=(nm,),
            in_specs=[
                pl.BlockSpec((TM, Cp), lambda m: (m, 0)),
                pl.BlockSpec((TM, Cp), lambda m: (m, 0)),
                pl.BlockSpec((1, Cp), lambda m: (0, 0)),
                pl.BlockSpec((1, Cp), lambda m: (0, 0)),
                pl.BlockSpec((1, Cp), lambda m: (0, 0)),
                pl.BlockSpec((1, Cp), lambda m: (0, 0)),
            ],
            out_specs=pl.BlockSpec((TM, Cp), lambda m: (m, 0)),
        ),
        compiler_params=pltpu.CompilerParams(
            dimension_semantics=("parallel",)),
    )(ya, yb, sa, ha, sb, hb)


# ---------------------------------------------------------------------------
# Layout glue (plain JAX)
# ---------------------------------------------------------------------------
def _weight_to_dense(weight, groups):
    """PyTorch conv weight (Cout, Cin//groups, KH, KW) -> dense (KH*KW*Cin, Cout)
    matmul weight with (kh, kw, cin) row ordering; block-diagonal across groups."""
    Cout, Cin_pg, KH, KW = weight.shape
    Cout_pg = Cout // groups
    w = weight.reshape(groups, Cout_pg, Cin_pg, KH, KW)
    w = jnp.transpose(w, (3, 4, 0, 2, 1))               # (KH, KW, G, Cin_pg, Cout_pg)
    eye = jnp.eye(groups, dtype=w.dtype)
    wd = jnp.einsum("hwgio,gk->hwgiko", w, eye)          # block-diagonal embedding
    return wd.reshape(KH * KW * groups * Cin_pg, Cout)


def _im2col(x_nhwc, ksize, stride, padding):
    """(N,H,W,C) -> (N*OH*OW, KH*KW*C) patches, (kh, kw, c) ordering along K."""
    # TODO(synk): fuse im2col into the matmul kernel (manual DMA of row bands +
    # shifted VMEM slices) to avoid materializing the 9x-expanded patches in HBM.
    N, H, W, C = x_nhwc.shape
    OH = (H + 2 * padding - ksize) // stride + 1
    OW = (W + 2 * padding - ksize) // stride + 1
    xp = jnp.pad(x_nhwc, ((0, 0), (padding, padding), (padding, padding), (0, 0)))
    cols = []
    for kh in range(ksize):
        for kw in range(ksize):
            cols.append(xp[:, kh:kh + (OH - 1) * stride + 1:stride,
                              kw:kw + (OW - 1) * stride + 1:stride, :])
    patches = jnp.stack(cols, axis=3)                    # (N, OH, OW, KH*KW, C)
    return patches.reshape(N * OH * OW, ksize * ksize * C), OH, OW


def _conv_block(p2d, weight, groups, gamma, beta, relu, out_dtype):
    """One ConvBlock (conv -> train-mode BN -> optional ReLU) on flattened patches.
    Conv bias omitted: a per-channel constant cancels under BN mean subtraction."""
    M = p2d.shape[0]
    w2d = _weight_to_dense(weight, groups)
    y, stats = _conv_stats_pallas(p2d, w2d)
    scale, shift = _bn_scale_shift(stats, M, gamma, beta)
    return _bn_act_pallas(y, scale, shift, relu, out_dtype)


def residual_block_forward(x_nchw, params, *, bold=True, cardinality=32, downsample=True):
    """ResidualBlock forward (all BNs in training mode, like the PyTorch module)."""
    N, Cin, H, W = x_nchw.shape
    stride = 1 if bold else 2
    x_nhwc = jnp.transpose(x_nchw, (0, 2, 3, 1)).astype(jnp.float32)

    C1 = params["w1"].shape[0]
    C2 = params["w2"].shape[0]
    C3 = params["w3"].shape[0]

    # ConvBlock 1: 1x1, stride 1, groups 1, ReLU.
    M1 = N * H * W
    a1 = _conv_block(x_nhwc.reshape(M1, Cin), params["w1"], 1,
                     params["g1"], params["b1"], relu=True, out_dtype=jnp.bfloat16)
    a1 = a1[:M1, :C1].reshape(N, H, W, C1)

    # ConvBlock 2: 3x3 grouped (cardinality), stride `stride`, padding 1, ReLU.
    p2, OH, OW = _im2col(a1, 3, stride, 1)
    M2 = N * OH * OW
    a2 = _conv_block(p2, params["w2"], cardinality,
                     params["g2"], params["b2"], relu=True, out_dtype=jnp.bfloat16)
    a2 = a2[:M2, :C2]

    # ConvBlock 3: 1x1, stride 1, groups 1, no activation (BN fused into final kernel).
    w3d = _weight_to_dense(params["w3"], 1)
    y3, stats3 = _conv_stats_pallas(a2, w3d)
    s3, h3 = _bn_scale_shift(stats3, M2, params["g3"], params["b3"])

    # Identity branch.
    if downsample:
        xd = x_nhwc[:, ::stride, ::stride, :].reshape(M2, Cin)
        wdd = _weight_to_dense(params["wd"], 1)
        yid, statsd = _conv_stats_pallas(xd, wdd)
        sid, hid = _bn_scale_shift(statsd, M2, params["gd"], params["bd"])
    else:
        assert bold and Cin == C3, "plain identity requires matching shapes"
        Mp, Cp = y3.shape
        yid = jnp.pad(x_nhwc.reshape(M2, Cin), ((0, Mp - M2), (0, Cp - Cin)))
        sid = jnp.ones((1, Cp), jnp.float32)
        hid = jnp.zeros((1, Cp), jnp.float32)

    # Fused: BN(conv3) + BN(identity) + residual add + ReLU.
    out = _bn_add_relu_pallas(y3, s3, h3, yid, sid, hid)
    out = out[:M2, :C3].reshape(N, OH, OW, C3)
    return jnp.transpose(out, (0, 3, 1, 2))


# ---------------------------------------------------------------------------
# Pure-JAX reference (mirrors the PyTorch module, f32 throughout)
# ---------------------------------------------------------------------------
def _conv_block_ref(x, weight, bias, gamma, beta, stride, padding, groups, relu):
    y = jax.lax.conv_general_dilated(
        x, weight, window_strides=(stride, stride),
        padding=[(padding, padding), (padding, padding)],
        dimension_numbers=("NCHW", "OIHW", "NCHW"),
        feature_group_count=groups,
        precision=jax.lax.Precision.HIGHEST)
    y = y + bias[None, :, None, None]
    mean = y.mean(axis=(0, 2, 3), keepdims=True)
    var = ((y - mean) ** 2).mean(axis=(0, 2, 3), keepdims=True)
    y = (y - mean) / jnp.sqrt(var + BN_EPS)
    y = y * gamma[None, :, None, None] + beta[None, :, None, None]
    return jnp.maximum(y, 0.0) if relu else y


def _residual_block_ref(x, params, bold, cardinality, downsample):
    stride = 1 if bold else 2
    y = _conv_block_ref(x, params["w1"], params["bias1"], params["g1"], params["b1"],
                        1, 0, 1, True)
    y = _conv_block_ref(y, params["w2"], params["bias2"], params["g2"], params["b2"],
                        stride, 1, cardinality, True)
    y = _conv_block_ref(y, params["w3"], params["bias3"], params["g3"], params["b3"],
                        1, 0, 1, False)
    if downsample:
        idn = _conv_block_ref(x, params["wd"], params["biasd"], params["gd"], params["bd"],
                              stride, 0, 1, False)
    else:
        idn = x
    return jnp.maximum(idn + y, 0.0)


if __name__ == "__main__":
    # Small ResNeXt residual block: 16 -> (1x1) 32 -> (3x3, groups=8) 32 -> (1x1) 64,
    # bold=True (stride 1), with a 1x1 identity-downsample ConvBlock.
    N, Cin, H, W = 2, 16, 16, 16
    C1, C2, C3 = 32, 32, 64
    cardinality = 8
    bold, downsample = True, True

    key = jax.random.PRNGKey(0)
    kx, k1, k2, k3, kd = jax.random.split(key, 5)
    x = jax.random.normal(kx, (N, Cin, H, W), dtype=jnp.float32)

    def conv_init(k, shape, ksize, cout):
        # module init: N(0, sqrt(2 / (k^2 * out_channels))), bias = 0
        std = float(np.sqrt(2.0 / (ksize ** 2 * cout)))
        return std * jax.random.normal(k, shape, dtype=jnp.float32)

    params = {
        "w1": conv_init(k1, (C1, Cin, 1, 1), 1, C1),
        "w2": conv_init(k2, (C2, C1 // cardinality, 3, 3), 3, C2),
        "w3": conv_init(k3, (C3, C2, 1, 1), 1, C3),
        "wd": conv_init(kd, (C3, Cin, 1, 1), 1, C3),
        # conv biases are zero at init (and cancel exactly under train-mode BN)
        "bias1": jnp.zeros((C1,), jnp.float32),
        "bias2": jnp.zeros((C2,), jnp.float32),
        "bias3": jnp.zeros((C3,), jnp.float32),
        "biasd": jnp.zeros((C3,), jnp.float32),
        # BatchNorm2d default affine init
        "g1": jnp.ones((C1,), jnp.float32), "b1": jnp.zeros((C1,), jnp.float32),
        "g2": jnp.ones((C2,), jnp.float32), "b2": jnp.zeros((C2,), jnp.float32),
        "g3": jnp.ones((C3,), jnp.float32), "b3": jnp.zeros((C3,), jnp.float32),
        "gd": jnp.ones((C3,), jnp.float32), "bd": jnp.zeros((C3,), jnp.float32),
    }

    fwd = jax.jit(functools.partial(residual_block_forward, bold=bold,
                                    cardinality=cardinality, downsample=downsample))
    out = jax.block_until_ready(fwd(x, params))

    ref = jax.block_until_ready(_residual_block_ref(x, params, bold, cardinality, downsample))
    assert out.shape == ref.shape
    # bf16 MXU inputs (f32 accumulation) chained across four convs -> bf16-level tolerance.
    np.testing.assert_allclose(np.asarray(out), np.asarray(ref), rtol=5e-2, atol=5e-2)

    print("KERNEL_OK")
</pallas_src>

<mosaic_0001>
module attributes {stable_mosaic.version = 11 : i64} {
  func.func @_matmul_stats_kernel(%arg0: i32, %arg1: memref<256x128xbf16, #tpu.memory_space<vmem>>, %arg2: memref<128x128xbf16, #tpu.memory_space<vmem>>, %arg3: memref<256x128xf32, #tpu.memory_space<vmem>>, %arg4: memref<1x2x128xf32, #tpu.memory_space<vmem>>) attributes {dimension_semantics = [#tpu.dimension_semantics<parallel>], iteration_bounds = array<i64: 2>, scalar_prefetch = 0 : i64, scratch_operands = 0 : i64, tpu.core_type = #tpu.core_type<tc>, window_params = [{transform_indices = @transform_0, window_bounds = array<i64: 256, 128>}, {pipeline_mode = #tpu.pipeline_mode<synchronous>, transform_indices = @transform_1, window_bounds = array<i64: 128, 128>}, {transform_indices = @transform_2, window_bounds = array<i64: 256, 128>}, {transform_indices = @transform_3, window_bounds = array<i64: 1, 2, 128>}]} {
    %c0 = arith.constant 0 : index
    %c0_0 = arith.constant 0 : index
    %0 = vector.load %arg1[%c0, %c0_0] : memref<256x128xbf16, #tpu.memory_space<vmem>>, vector<256x128xbf16>
    %c0_1 = arith.constant 0 : index
    %c0_2 = arith.constant 0 : index
    %1 = vector.load %arg2[%c0_1, %c0_2] : memref<128x128xbf16, #tpu.memory_space<vmem>>, vector<128x128xbf16>
    %cst = arith.constant dense<0.000000e+00> : vector<256x128xf32>
    %2 = tpu.matmul %0, %1, %cst {dimension_numbers = #tpu.dot_dimension_numbers<[1], [0], [0], [1], [0, 0, 1, 1], [], []>} : vector<256x128xbf16>, vector<128x128xbf16>, vector<256x128xf32> -> vector<256x128xf32>
    %c0_3 = arith.constant 0 : index
    %c0_4 = arith.constant 0 : index
    %3 = vector.load %arg3[%c0_3, %c0_4] : memref<256x128xf32, #tpu.memory_space<vmem>>, vector<256x128xf32>
    tpu.vector_store %arg3[%c0_3, %c0_4], %2 {strides = array<i32>} : memref<256x128xf32, #tpu.memory_space<vmem>>, vector<256x128xf32>,
    %cst_5 = arith.constant dense<0.000000e+00> : vector<128xf32>
    %4 = vector.multi_reduction <add>, %2, %cst_5 [0] : vector<256x128xf32> to vector<128xf32>
    %5 = vector.shape_cast %4 : vector<128xf32> to vector<1x128xf32>
    %6 = arith.mulf %2, %2 : vector<256x128xf32>
    %cst_6 = arith.constant dense<0.000000e+00> : vector<128xf32>
    %7 = vector.multi_reduction <add>, %6, %cst_6 [0] : vector<256x128xf32> to vector<128xf32>
    %8 = vector.shape_cast %7 : vector<128xf32> to vector<1x128xf32>
    %9 = tpu.concatenate %5, %8 in 0 : vector<1x128xf32>, vector<1x128xf32> -> vector<2x128xf32>
    %10 = vector.shape_cast %9 : vector<2x128xf32> to vector<1x2x128xf32>
    %c0_7 = arith.constant 0 : index
    %c0_8 = arith.constant 0 : index
    %c0_9 = arith.constant 0 : index
    %11 = vector.load %arg4[%c0_7, %c0_8, %c0_9] : memref<1x2x128xf32, #tpu.memory_space<vmem>>, vector<1x2x128xf32>
    tpu.vector_store %arg4[%c0_7, %c0_8, %c0_9], %10 {strides = array<i32>} : memref<1x2x128xf32, #tpu.memory_space<vmem>>, vector<1x2x128xf32>,
    return
  }
  func.func @transform_0(%arg0: i32) -> (i32, i32) {
    %c0_i32 = arith.constant 0 : i32
    %c0_i32_0 = arith.constant 0 : i32
    return %arg0, %c0_i32 : i32, i32
  }
  func.func @transform_1(%arg0: i32) -> (i32, i32) {
    %c0_i32 = arith.constant 0 : i32
    %c0_i32_0 = arith.constant 0 : i32
    %c0_i32_1 = arith.constant 0 : i32
    return %c0_i32, %c0_i32_0 : i32, i32
  }
  func.func @transform_2(%arg0: i32) -> (i32, i32) {
    %c0_i32 = arith.constant 0 : i32
    %c0_i32_0 = arith.constant 0 : i32
    return %arg0, %c0_i32 : i32, i32
  }
  func.func @transform_3(%arg0: i32) -> (i32, i32, i32) {
    %c0_i32 = arith.constant 0 : i32
    %c0_i32_0 = arith.constant 0 : i32
    %c0_i32_1 = arith.constant 0 : i32
    return %arg0, %c0_i32, %c0_i32_0 : i32, i32, i32
  }
}

module attributes {stable_mosaic.version = 11 : i64} {
  func.func @_bn_act_kernel(%arg0: i32, %arg1: memref<256x128xf32, #tpu.memory_space<vmem>>, %arg2: memref<1x128xf32, #tpu.memory_space<vmem>>, %arg3: memref<1x128xf32, #tpu.memory_space<vmem>>, %arg4: memref<256x128xbf16, #tpu.memory_space<vmem>>) attributes {dimension_semantics = [#tpu.dimension_semantics<parallel>], iteration_bounds = array<i64: 2>, scalar_prefetch = 0 : i64, scratch_operands = 0 : i64, tpu.core_type = #tpu.core_type<tc>, window_params = [{transform_indices = @transform_0, window_bounds = array<i64: 256, 128>}, {pipeline_mode = #tpu.pipeline_mode<synchronous>, transform_indices = @transform_1, window_bounds = array<i64: 1, 128>}, {pipeline_mode = #tpu.pipeline_mode<synchronous>, transform_indices = @transform_2, window_bounds = array<i64: 1, 128>}, {transform_indices = @transform_3, window_bounds = array<i64: 256, 128>}]} {
    %c0 = arith.constant 0 : index
    %c0_0 = arith.constant 0 : index
    %0 = vector.load %arg1[%c0, %c0_0] : memref<256x128xf32, #tpu.memory_space<vmem>>, vector<256x128xf32>
    %c0_1 = arith.constant 0 : index
    %c0_2 = arith.constant 0 : index
    %1 = vector.load %arg2[%c0_1, %c0_2] : memref<1x128xf32, #tpu.memory_space<vmem>>, vector<1x128xf32>
    %2 = vector.broadcast %1 : vector<1x128xf32> to vector<256x128xf32>
    %3 = arith.mulf %0, %2 : vector<256x128xf32>
    %c0_3 = arith.constant 0 : index
    %c0_4 = arith.constant 0 : index
    %4 = vector.load %arg3[%c0_3, %c0_4] : memref<1x128xf32, #tpu.memory_space<vmem>>, vector<1x128xf32>
    %5 = vector.broadcast %4 : vector<1x128xf32> to vector<256x128xf32>
    %6 = arith.addf %3, %5 : vector<256x128xf32>
    %cst = arith.constant 0.000000e+00 : f32
    %7 = vector.broadcast %cst : f32 to vector<256x128xf32>
    %8 = arith.maximumf %6, %7 : vector<256x128xf32>
    %9 = arith.truncf %8 : vector<256x128xf32> to vector<256x128xbf16>
    %c0_5 = arith.constant 0 : index
    %c0_6 = arith.constant 0 : index
    %10 = vector.load %arg4[%c0_5, %c0_6] : memref<256x128xbf16, #tpu.memory_space<vmem>>, vector<256x128xbf16>
    tpu.vector_store %arg4[%c0_5, %c0_6], %9 {strides = array<i32>} : memref<256x128xbf16, #tpu.memory_space<vmem>>, vector<256x128xbf16>,
    return
  }
  func.func @transform_0(%arg0: i32) -> (i32, i32) {
    %c0_i32 = arith.constant 0 : i32
    %c0_i32_0 = arith.constant 0 : i32
    return %arg0, %c0_i32 : i32, i32
  }
  func.func @transform_1(%arg0: i32) -> (i32, i32) {
    %c0_i32 = arith.constant 0 : i32
    %c0_i32_0 = arith.constant 0 : i32
    %c0_i32_1 = arith.constant 0 : i32
    return %c0_i32, %c0_i32_0 : i32, i32
  }
  func.func @transform_2(%arg0: i32) -> (i32, i32) {
    %c0_i32 = arith.constant 0 : i32
    %c0_i32_0 = arith.constant 0 : i32
    %c0_i32_1 = arith.constant 0 : i32
    return %c0_i32, %c0_i32_0 : i32, i32
  }
  func.func @transform_3(%arg0: i32) -> (i32, i32) {
    %c0_i32 = arith.constant 0 : i32
    %c0_i32_0 = arith.constant 0 : i32
    return %arg0, %c0_i32 : i32, i32
  }
}

module attributes {stable_mosaic.version = 11 : i64} {
  func.func @_matmul_stats_kernel(%arg0: i32, %arg1: memref<256x384xbf16, #tpu.memory_space<vmem>>, %arg2: memref<384x128xbf16, #tpu.memory_space<vmem>>, %arg3: memref<256x128xf32, #tpu.memory_space<vmem>>, %arg4: memref<1x2x128xf32, #tpu.memory_space<vmem>>) attributes {dimension_semantics = [#tpu.dimension_semantics<parallel>], iteration_bounds = array<i64: 2>, scalar_prefetch = 0 : i64, scratch_operands = 0 : i64, tpu.core_type = #tpu.core_type<tc>, window_params = [{transform_indices = @transform_0, window_bounds = array<i64: 256, 384>}, {pipeline_mode = #tpu.pipeline_mode<synchronous>, transform_indices = @transform_1, window_bounds = array<i64: 384, 128>}, {transform_indices = @transform_2, window_bounds = array<i64: 256, 128>}, {transform_indices = @transform_3, window_bounds = array<i64: 1, 2, 128>}]} {
    %c0 = arith.constant 0 : index
    %c0_0 = arith.constant 0 : index
    %0 = vector.load %arg1[%c0, %c0_0] : memref<256x384xbf16, #tpu.memory_space<vmem>>, vector<256x384xbf16>
    %c0_1 = arith.constant 0 : index
    %c0_2 = arith.constant 0 : index
    %1 = vector.load %arg2[%c0_1, %c0_2] : memref<384x128xbf16, #tpu.memory_space<vmem>>, vector<384x128xbf16>
    %cst = arith.constant dense<0.000000e+00> : vector<256x128xf32>
    %2 = tpu.matmul %0, %1, %cst {dimension_numbers = #tpu.dot_dimension_numbers<[1], [0], [0], [1], [0, 0, 1, 1], [], []>} : vector<256x384xbf16>, vector<384x128xbf16>, vector<256x128xf32> -> vector<256x128xf32>
    %c0_3 = arith.constant 0 : index
    %c0_4 = arith.constant 0 : index
    %3 = vector.load %arg3[%c0_3, %c0_4] : memref<256x128xf32, #tpu.memory_space<vmem>>, vector<256x128xf32>
    tpu.vector_store %arg3[%c0_3, %c0_4], %2 {strides = array<i32>} : memref<256x128xf32, #tpu.memory_space<vmem>>, vector<256x128xf32>,
    %cst_5 = arith.constant dense<0.000000e+00> : vector<128xf32>
    %4 = vector.multi_reduction <add>, %2, %cst_5 [0] : vector<256x128xf32> to vector<128xf32>
    %5 = vector.shape_cast %4 : vector<128xf32> to vector<1x128xf32>
    %6 = arith.mulf %2, %2 : vector<256x128xf32>
    %cst_6 = arith.constant dense<0.000000e+00> : vector<128xf32>
    %7 = vector.multi_reduction <add>, %6, %cst_6 [0] : vector<256x128xf32> to vector<128xf32>
    %8 = vector.shape_cast %7 : vector<128xf32> to vector<1x128xf32>
    %9 = tpu.concatenate %5, %8 in 0 : vector<1x128xf32>, vector<1x128xf32> -> vector<2x128xf32>
    %10 = vector.shape_cast %9 : vector<2x128xf32> to vector<1x2x128xf32>
    %c0_7 = arith.constant 0 : index
    %c0_8 = arith.constant 0 : index
    %c0_9 = arith.constant 0 : index
    %11 = vector.load %arg4[%c0_7, %c0_8, %c0_9] : memref<1x2x128xf32, #tpu.memory_space<vmem>>, vector<1x2x128xf32>
    tpu.vector_store %arg4[%c0_7, %c0_8, %c0_9], %10 {strides = array<i32>} : memref<1x2x128xf32, #tpu.memory_space<vmem>>, vector<1x2x128xf32>,
    return
  }
  func.func @transform_0(%arg0: i32) -> (i32, i32) {
    %c0_i32 = arith.constant 0 : i32
    %c0_i32_0 = arith.constant 0 : i32
    return %arg0, %c0_i32 : i32, i32
  }
  func.func @transform_1(%arg0: i32) -> (i32, i32) {
    %c0_i32 = arith.constant 0 : i32
    %c0_i32_0 = arith.constant 0 : i32
    %c0_i32_1 = arith.constant 0 : i32
    return %c0_i32, %c0_i32_0 : i32, i32
  }
  func.func @transform_2(%arg0: i32) -> (i32, i32) {
    %c0_i32 = arith.constant 0 : i32
    %c0_i32_0 = arith.constant 0 : i32
    return %arg0, %c0_i32 : i32, i32
  }
  func.func @transform_3(%arg0: i32) -> (i32, i32, i32) {
    %c0_i32 = arith.constant 0 : i32
    %c0_i32_0 = arith.constant 0 : i32
    %c0_i32_1 = arith.constant 0 : i32
    return %arg0, %c0_i32, %c0_i32_0 : i32, i32, i32
  }
}

module attributes {stable_mosaic.version = 11 : i64} {
  func.func @_bn_add_relu_kernel(%arg0: i32, %arg1: memref<256x128xf32, #tpu.memory_space<vmem>>, %arg2: memref<256x128xf32, #tpu.memory_space<vmem>>, %arg3: memref<1x128xf32, #tpu.memory_space<vmem>>, %arg4: memref<1x128xf32, #tpu.memory_space<vmem>>, %arg5: memref<1x128xf32, #tpu.memory_space<vmem>>, %arg6: memref<1x128xf32, #tpu.memory_space<vmem>>, %arg7: memref<256x128xf32, #tpu.memory_space<vmem>>) attributes {dimension_semantics = [#tpu.dimension_semantics<parallel>], iteration_bounds = array<i64: 2>, scalar_prefetch = 0 : i64, scratch_operands = 0 : i64, tpu.core_type = #tpu.core_type<tc>, window_params = [{transform_indices = @transform_0, window_bounds = array<i64: 256, 128>}, {transform_indices = @transform_1, window_bounds = array<i64: 256, 128>}, {pipeline_mode = #tpu.pipeline_mode<synchronous>, transform_indices = @transform_2, window_bounds = array<i64: 1, 128>}, {pipeline_mode = #tpu.pipeline_mode<synchronous>, transform_indices = @transform_3, window_bounds = array<i64: 1, 128>}, {pipeline_mode = #tpu.pipeline_mode<synchronous>, transform_indices = @transform_4, window_bounds = array<i64: 1, 128>}, {pipeline_mode = #tpu.pipeline_mode<synchronous>, transform_indices = @transform_5, window_bounds = array<i64: 1, 128>}, {transform_indices = @transform_6, window_bounds = array<i64: 256, 128>}]} {
    %c0 = arith.constant 0 : index
    %c0_0 = arith.constant 0 : index
    %0 = vector.load %arg1[%c0, %c0_0] : memref<256x128xf32, #tpu.memory_space<vmem>>, vector<256x128xf32>
    %c0_1 = arith.constant 0 : index
    %c0_2 = arith.constant 0 : index
    %1 = vector.load %arg3[%c0_1, %c0_2] : memref<1x128xf32, #tpu.memory_space<vmem>>, vector<1x128xf32>
    %2 = vector.broadcast %1 : vector<1x128xf32> to vector<256x128xf32>
    %3 = arith.mulf %0, %2 : vector<256x128xf32>
    %c0_3 = arith.constant 0 : index
    %c0_4 = arith.constant 0 : index
    %4 = vector.load %arg4[%c0_3, %c0_4] : memref<1x128xf32, #tpu.memory_space<vmem>>, vector<1x128xf32>
    %5 = vector.broadcast %4 : vector<1x128xf32> to vector<256x128xf32>
    %6 = arith.addf %3, %5 : vector<256x128xf32>
    %c0_5 = arith.constant 0 : index
    %c0_6 = arith.constant 0 : index
    %7 = vector.load %arg2[%c0_5, %c0_6] : memref<256x128xf32, #tpu.memory_space<vmem>>, vector<256x128xf32>
    %c0_7 = arith.constant 0 : index
    %c0_8 = arith.constant 0 : index
    %8 = vector.load %arg5[%c0_7, %c0_8] : memref<1x128xf32, #tpu.memory_space<vmem>>, vector<1x128xf32>
    %9 = vector.broadcast %8 : vector<1x128xf32> to vector<256x128xf32>
    %10 = arith.mulf %7, %9 : vector<256x128xf32>
    %c0_9 = arith.constant 0 : index
    %c0_10 = arith.constant 0 : index
    %11 = vector.load %arg6[%c0_9, %c0_10] : memref<1x128xf32, #tpu.memory_space<vmem>>, vector<1x128xf32>
    %12 = vector.broadcast %11 : vector<1x128xf32> to vector<256x128xf32>
    %13 = arith.addf %10, %12 : vector<256x128xf32>
    %14 = arith.addf %6, %13 : vector<256x128xf32>
    %cst = arith.constant 0.000000e+00 : f32
    %15 = vector.broadcast %cst : f32 to vector<256x128xf32>
    %16 = arith.maximumf %14, %15 : vector<256x128xf32>
    %c0_11 = arith.constant 0 : index
    %c0_12 = arith.constant 0 : index
    %17 = vector.load %arg7[%c0_11, %c0_12] : memref<256x128xf32, #tpu.memory_space<vmem>>, vector<256x128xf32>
    tpu.vector_store %arg7[%c0_11, %c0_12], %16 {strides = array<i32>} : memref<256x128xf32, #tpu.memory_space<vmem>>, vector<256x128xf32>,
    return
  }
  func.func @transform_0(%arg0: i32) -> (i32, i32) {
    %c0_i32 = arith.constant 0 : i32
    %c0_i32_0 = arith.constant 0 : i32
    return %arg0, %c0_i32 : i32, i32
  }
  func.func @transform_1(%arg0: i32) -> (i32, i32) {
    %c0_i32 = arith.constant 0 : i32
    %c0_i32_0 = arith.constant 0 : i32
    return %arg0, %c0_i32 : i32, i32
  }
  func.func @transform_2(%arg0: i32) -> (i32, i32) {
    %c0_i32 = arith.constant 0 : i32
    %c0_i32_0 = arith.constant 0 : i32
    %c0_i32_1 = arith.constant 0 : i32
    return %c0_i32, %c0_i32_0 : i32, i32
  }
  func.func @transform_3(%arg0: i32) -> (i32, i32) {
    %c0_i32 = arith.constant 0 : i32
    %c0_i32_0 = arith.constant 0 : i32
    %c0_i32_1 = arith.constant 0 : i32
    return %c0_i32, %c0_i32_0 : i32, i32
  }
  func.func @transform_4(%arg0: i32) -> (i32, i32) {
    %c0_i32 = arith.constant 0 : i32
    %c0_i32_0 = arith.constant 0 : i32
    %c0_i32_1 = arith.constant 0 : i32
    return %c0_i32, %c0_i32_0 : i32, i32
  }
  func.func @transform_5(%arg0: i32) -> (i32, i32) {
    %c0_i32 = arith.constant 0 : i32
    %c0_i32_0 = arith.constant 0 : i32
    %c0_i32_1 = arith.constant 0 : i32
    return %c0_i32, %c0_i32_0 : i32, i32
  }
  func.func @transform_6(%arg0: i32) -> (i32, i32) {
    %c0_i32 = arith.constant 0 : i32
    %c0_i32_0 = arith.constant 0 : i32
    return %arg0, %c0_i32 : i32, i32
  }
}

</mosaic_0001>

<bundles_post_ra>
// kernel: residual_block_forward.7
= control target key start
LH: loop header
LB: loop body
LE: loop exit
PB: predicated region body
PF: predicated region fallthrough
CT: control target
= control target key end

     0   :  { %s951_s12 = smov 0   ;;  %s1140_s0 = inlined_call_operand.vmem [shape: bf16[512,128], index: 0, kind: input, shape index: {}]   ;;  %s1141_s1 = inlined_call_operand.vmem [shape: bf16[128,128], index: 1, kind: input, shape index: {}]   ;;  %s1142_s2 = inlined_call_operand.vmem [shape: f32[512,128], index: 2, kind: output, shape index: {0}]   ;;  %s1143_s3 = inlined_call_operand.vmem [shape: f32[2,2,128], index: 3, kind: output, shape index: {1}]  }
   0x1 LB: > { %s957_s13 = sadd.s32 4294967295, %s929_s12   ;;  %p771_p0 = scmp.ge.s32.totalorder %s929_s12, 1  ;;  %s929_s12 = sphi %s951_s12, %s14_s12  }
   0x2   : > { %p141_p1 = scmp.lt.s32.totalorder %s929_s12, 3 }
   0x4   : > { %p142_p2 = pnand %p771_p0, %p141_p1 }
   0x5   : > { %s772_s16 = sshll.u32 (!%p142_p2), %s957_s13, 5  ;;  %p181_p4 = scmp.lt.s32.totalorder (!%p142_p2), %s957_s13, 1 }
   0x6   : > { %145 = sbr.rel (%p142_p2) target bundleno = 321 (0x141), region = 28  ;;  %p170_p3 = scmp.lt.s32.totalorder (!%p142_p2), %s772_s16, 63 }
   0xb   : > { %v899_v0 = vld [vmem:[%s1141_s1 + $0x38] sm:$0xff]   ;;  %v900_v1 = vld [vmem:[%s1141_s1 + $0x30] sm:$0xff]   ;;  %s1145_s16 = smov (!%p170_p3, %s772_s16), 63  ;;  %v901_v2 = vld [vmem:[%s1141_s1 + $0x28] sm:$0xff]   ;;  %s1147_s13 = smov (!%p181_p4, %s957_s13), 1  ;;  %vm677_vm0 = vcmask 1040384  }
   0xc   : > { %827 = vmatprep.subr.bf16.mxu0 %v899_v0  ;;  %875 = vmatprep.subr.bf16.mxu1 %v899_v0  ;;  %s773_s21 = sshll.u32 %s1145_s16, 2  ;;  %v902_v3 = vld [vmem:[%s1141_s1 + $0x20] sm:$0xff]   ;;  %v903_v5 = vld [vmem:[%s1141_s1 + $0x18] sm:$0xff]   ;;  %v904_v6 = vld [vmem:[%s1141_s1 + $0x10] sm:$0xff]   ;;  %s775_s8 = sshll.u32 %s1145_s16, 3 }
   0xd   : > { %828 = vmatpush3.bf16.msra.mxu0 %v899_v0  ;;  %883 = vmatpush3.bf16.msra.mxu1 %v899_v0  ;;  %s977_s24 = scalar_lea.vmem %s1140_s0, %s773_s21  ;;  %v905_v8 = vld [vmem:[%s1141_s1 + $0x8] sm:$0xff]   ;;  %v906_v9 = vld [vmem:[%s1141_s1] sm:$0xff]   ;;  %s1014_s11 = scalar_lea.vmem %s1142_s2, %s775_s8 }
   0xe   : > { %829 = vmatprep.subr.bf16.mxu0 %v900_v1  ;;  %876 = vmatprep.subr.bf16.mxu1 %v900_v1  ;;  %v907_v4 = vld [vmem:[%s977_s24] sm:$0xff]   ;;  %v908_v10 = vld [vmem:[%s977_s24 + $0x8] sm:$0xff]   ;;  %v909_v12 = vld [vmem:[%s977_s24 + $0x10] sm:$0xff]   ;;  %s776_s14 = sshll.u32 %s1147_s13, 1 }
   0xf   : > { %843 = vmatprep.mubr.bf16.mxu0 %v907_v4  ;;  %v915_v7 = vld [vmem:[%s977_s24 + $0x40] sm:$0xff]   ;;  %v916_v11 = vld [vmem:[%s977_s24 + $0x48] sm:$0xff]   ;;  %v917_v13 = vld [vmem:[%s977_s24 + $0x50] sm:$0xff]   ;;  %s184_s17 = scalar_lea.vmem %s1143_s3, %s776_s14 }
  0x10   : > { %859 = vmatprep.mubr.bf16.mxu1 %v915_v7  ;;  %v910_v14 = vld [vmem:[%s977_s24 + $0x18] sm:$0xff]   ;;  %v911_v16 = vld [vmem:[%s977_s24 + $0x20] sm:$0xff]   ;;  %v912_v18 = vld [vmem:[%s977_s24 + $0x28] sm:$0xff]  }
  0x11   : > { %830 = vmatpush3.bf16.msra.mxu0 %v900_v1  ;;  %884 = vmatpush3.bf16.msra.mxu1 %v900_v1  ;;  %v918_v15 = vld [vmem:[%s977_s24 + $0x58] sm:$0xff]   ;;  %v919_v17 = vld [vmem:[%s977_s24 + $0x60] sm:$0xff]   ;;  %v920_v19 = vld [vmem:[%s977_s24 + $0x68] sm:$0xff]  }
  0x12   : > { %831 = vmatprep.subr.bf16.mxu0 %v901_v2  ;;  %877 = vmatprep.subr.bf16.mxu1 %v901_v2  ;;  %v913_v20 = vld [vmem:[%s977_s24 + $0x30] sm:$0xff]   ;;  %v914_v22 = vld [vmem:[%s977_s24 + $0x38] sm:$0xff]  }
  0x13   : > { %v921_v21 = vld [vmem:[%s977_s24 + $0x70] sm:$0xff]   ;;  %v922_v23 = vld [vmem:[%s977_s24 + $0x78] sm:$0xff]  }
  0x15   : > { %832 = vmatpush3.bf16.msra.mxu0 %v901_v2  ;;  %885 = vmatpush3.bf16.msra.mxu1 %v901_v2 }
  0x16   : > { %833 = vmatprep.subr.bf16.mxu0 %v902_v3  ;;  %878 = vmatprep.subr.bf16.mxu1 %v902_v3 }
  0x19   : > { %834 = vmatpush3.bf16.msra.mxu0 %v902_v3  ;;  %886 = vmatpush3.bf16.msra.mxu1 %v902_v3 }
  0x1a   : > { %835 = vmatprep.subr.bf16.mxu0 %v903_v5  ;;  %879 = vmatprep.subr.bf16.mxu1 %v903_v5 }
  0x1d   : > { %836 = vmatpush3.bf16.msra.mxu0 %v903_v5  ;;  %887 = vmatpush3.bf16.msra.mxu1 %v903_v5 }
  0x1e   : > { %837 = vmatprep.subr.bf16.mxu0 %v904_v6  ;;  %880 = vmatprep.subr.bf16.mxu1 %v904_v6 }
  0x21   : > { %838 = vmatpush3.bf16.msra.mxu0 %v904_v6  ;;  %888 = vmatpush3.bf16.msra.mxu1 %v904_v6 }
  0x22   : > { %839 = vmatprep.subr.bf16.mxu0 %v905_v8  ;;  %881 = vmatprep.subr.bf16.mxu1 %v905_v8 }
  0x25   : > { %840 = vmatpush3.bf16.msra.mxu0 %v905_v8  ;;  %889 = vmatpush3.bf16.msra.mxu1 %v905_v8 }
  0x26   : > { %841 = vmatprep.subr.bf16.mxu0 %v906_v9  ;;  %882 = vmatprep.subr.bf16.mxu1 %v906_v9 }
  0x29   : > { %842 = vmatpush3.bf16.msra.mxu0 %v906_v9  ;;  %890 = vmatpush3.bf16.msra.mxu1 %v906_v9 }
  0x2c   : > { %844 = vmatmul.mubr.bf16.vlgmr.msra.gmra.mxu0 %v908_v10  ;;  %860 = vmatmul.mubr.bf16.vlgmr.msra.gmra.mxu1 %v916_v11 }
  0x2d   : > { %847 = vmatprep.mubr.bf16.mxu0 %v909_v12  ;;  %863 = vmatprep.mubr.bf16.mxu1 %v917_v13 }
  0x34   : > { %848 = vmatmul.mubr.bf16.gmra.mxu0 %v910_v14  ;;  %864 = vmatmul.mubr.bf16.gmra.mxu1 %v918_v15 }
  0x35   : > { %851 = vmatprep.mubr.bf16.mxu0 %v911_v16  ;;  %867 = vmatprep.mubr.bf16.mxu1 %v919_v17 }
  0x3c   : > { %852 = vmatmul.mubr.bf16.gmra.mxu0 %v912_v18  ;;  %868 = vmatmul.mubr.bf16.gmra.mxu1 %v920_v19 }
  0x3d   : > { %855 = vmatprep.mubr.bf16.mxu0 %v913_v20  ;;  %871 = vmatprep.mubr.bf16.mxu1 %v921_v21 }
  0x44   : > { %856 = vmatmul.mubr.bf16.gmra.mxu0 %v914_v22  ;;  %872 = vmatmul.mubr.bf16.gmra.mxu1 %v922_v23 }
  0xec   : > { %v845_v24 = vpop.f32.mrf.mxu0  ;;  %v1016_v25 = vpop.f32.mrf.mxu1 }
  0xed   : > { %541 = vst [vmem:[%s1014_s11 + $0x10] sm:$0xff] %v845_v24  ;;  %557 = vst [vmem:[%s1014_s11 + $0x90] sm:$0xff] %v1016_v25  ;;  %v610_v37 = vmul.f32 %v845_v24, %v845_v24 }
  0xee   : > { %v412_v26 = vpop.f32.mrf.mxu0  ;;  %v1021_v27 = vpop.f32.mrf.mxu1 }
  0xef   : > { %539 = vst [vmem:[%s1014_s11] sm:$0xff] %v412_v26  ;;  %555 = vst [vmem:[%s1014_s11 + $0x80] sm:$0xff] %v1021_v27  ;;  %v608_v32 = vmul.f32 %v412_v26, %v412_v26 }
  0xf0   : > { %v846_v28 = vpop.f32.mrf.mxu0  ;;  %v1026_v29 = vpop.f32.mrf.mxu1 }
  0xf1   : > { %542 = vst [vmem:[%s1014_s11 + $0x18] sm:$0xff] %v846_v28  ;;  %558 = vst [vmem:[%s1014_s11 + $0x98] sm:$0xff] %v1026_v29  ;;  %v611_v42 = vmul.f32 %v846_v28, %v846_v28 }
  0xf2   : > { %v415_v30 = vpop.f32.mrf.mxu0  ;;  %v1031_v31 = vpop.f32.mrf.mxu1 }
  0xf3   : > { %540 = vst [vmem:[%s1014_s11 + $0x8] sm:$0xff] %v415_v30  ;;  %v571_v33 = vadd.f32 %v415_v30, %v412_v26  ;;  %v609_v34 = vmul.f32 %v415_v30, %v415_v30  ;;  %556 = vst [vmem:[%s1014_s11 + $0x88] sm:$0xff] %v1031_v31 }
  0xf4   : > { %v849_v35 = vpop.f32.mrf.mxu0  ;;  %v1036_v36 = vpop.f32.mrf.mxu1 }
  0xf5   : > { %v572_v38 = vadd.f32 %v845_v24, %v571_v33  ;;  %v640_v39 = vadd.f32 %v609_v34, %v608_v32  ;;  %545 = vst [vmem:[%s1014_s11 + $0x30] sm:$0xff] %v849_v35  ;;  %561 = vst [vmem:[%s1014_s11 + $0xb0] sm:$0xff] %v1036_v36  ;;  %v614_v57 = vmul.f32 %v849_v35, %v849_v35 }
  0xf6   : > { %v428_v40 = vpop.f32.mrf.mxu0  ;;  %v1041_v41 = vpop.f32.mrf.mxu1 }
  0xf7   : > { %v641_v43 = vadd.f32 %v640_v39, %v610_v37  ;;  %543 = vst [vmem:[%s1014_s11 + $0x20] sm:$0xff] %v428_v40  ;;  %v573_v44 = vadd.f32 %v846_v28, %v572_v38  ;;  %559 = vst [vmem:[%s1014_s11 + $0xa0] sm:$0xff] %v1041_v41  ;;  %v612_v48 = vmul.f32 %v428_v40, %v428_v40 }
  0xf8   : > { %v850_v45 = vpop.f32.mrf.mxu0  ;;  %v1046_v46 = vpop.f32.mrf.mxu1 }
  0xf9   : > { %v574_v47 = vadd.f32 %v573_v44, %v428_v40  ;;  %v642_v49 = vadd.f32 %v641_v43, %v611_v42  ;;  %546 = vst [vmem:[%s1014_s11 + $0x38] sm:$0xff] %v850_v45  ;;  %562 = vst [vmem:[%s1014_s11 + $0xb8] sm:$0xff] %v1046_v46  ;;  %v615_v62 = vmul.f32 %v850_v45, %v850_v45 }
  0xfa   : > { %v431_v50 = vpop.f32.mrf.mxu0  ;;  %v1051_v51 = vpop.f32.mrf.mxu1  ;;  %v624_v43 = vmul.f32 %v1021_v27, %v1021_v27 }
  0xfb   : > { %v643_v52 = vadd.f32 %v642_v49, %v612_v48  ;;  %544 = vst [vmem:[%s1014_s11 + $0x28] sm:$0xff] %v431_v50  ;;  %v575_v53 = vadd.f32 %v574_v47, %v431_v50  ;;  %v613_v54 = vmul.f32 %v431_v50, %v431_v50  ;;  %560 = vst [vmem:[%s1014_s11 + $0xa8] sm:$0xff] %v1051_v51 }
  0xfc   : > { %v853_v55 = vpop.f32.mrf.mxu0  ;;  %v1056_v56 = vpop.f32.mrf.mxu1  ;;  %v625_v48 = vmul.f32 %v1031_v31, %v1031_v31  ;;  %v626_v50 = vmul.f32 %v1016_v25, %v1016_v25 }
  0xfd   : > { %v576_v58 = vadd.f32 %v849_v35, %v575_v53  ;;  %v644_v59 = vadd.f32 %v643_v52, %v613_v54  ;;  %549 = vst [vmem:[%s1014_s11 + $0x50] sm:$0xff] %v853_v55  ;;  %565 = vst [vmem:[%s1014_s11 + $0xd0] sm:$0xff] %v1056_v56  ;;  %v618_v13 = vmul.f32 %v853_v55, %v853_v55 }
  0xfe   : > { %v444_v60 = vpop.f32.mrf.mxu0  ;;  %v1061_v61 = vpop.f32.mrf.mxu1  ;;  %v627_v54 = vmul.f32 %v1026_v29, %v1026_v29 }
  0xff   : > { %v645_v63 = vadd.f32 %v644_v59, %v614_v57  ;;  %547 = vst [vmem:[%s1014_s11 + $0x40] sm:$0xff] %v444_v60  ;;  %v577_v0 = vadd.f32 %v850_v45, %v576_v58  ;;  %563 = vst [vmem:[%s1014_s11 + $0xc0] sm:$0xff] %v1061_v61  ;;  %v616_v4 = vmul.f32 %v444_v60, %v444_v60 }
 0x100   : > { %v854_v1 = vpop.f32.mrf.mxu0  ;;  %v1066_v2 = vpop.f32.mrf.mxu1  ;;  %v628_v58 = vmul.f32 %v1041_v41, %v1041_v41 }
 0x101   : > { %v578_v3 = vadd.f32 %v577_v0, %v444_v60  ;;  %v646_v5 = vadd.f32 %v645_v63, %v615_v62  ;;  %550 = vst [vmem:[%s1014_s11 + $0x58] sm:$0xff] %v854_v1  ;;  %566 = vst [vmem:[%s1014_s11 + $0xd8] sm:$0xff] %v1066_v2  ;;  %v619_v18 = vmul.f32 %v854_v1, %v854_v1 }
 0x102   : > { %v447_v6 = vpop.f32.mrf.mxu0  ;;  %v1071_v7 = vpop.f32.mrf.mxu1  ;;  %v629_v62 = vmul.f32 %v1051_v51, %v1051_v51 }
 0x103   : > { %v647_v8 = vadd.f32 %v646_v5, %v616_v4  ;;  %548 = vst [vmem:[%s1014_s11 + $0x48] sm:$0xff] %v447_v6  ;;  %v579_v9 = vadd.f32 %v578_v3, %v447_v6  ;;  %v617_v10 = vmul.f32 %v447_v6, %v447_v6  ;;  %564 = vst [vmem:[%s1014_s11 + $0xc8] sm:$0xff] %v1071_v7 }
 0x104   : > { %v857_v11 = vpop.f32.mrf.mxu0  ;;  %v1076_v12 = vpop.f32.mrf.mxu1  ;;  %v632_v4 = vmul.f32 %v1061_v61, %v1061_v61 }
 0x105   : > { %v580_v14 = vadd.f32 %v853_v55, %v579_v9  ;;  %v648_v15 = vadd.f32 %v647_v8, %v617_v10  ;;  %553 = vst [vmem:[%s1014_s11 + $0x70] sm:$0xff] %v857_v11  ;;  %569 = vst [vmem:[%s1014_s11 + $0xf0] sm:$0xff] %v1076_v12  ;;  %v622_v35 = vmul.f32 %v857_v11, %v857_v11 }
 0x106   : > { %v460_v16 = vpop.f32.mrf.mxu0  ;;  %v524_v17 = vpop.f32.mrf.mxu1  ;;  %v633_v8 = vmul.f32 %v1071_v7, %v1071_v7 }
 0x107   : > { %v649_v19 = vadd.f32 %v648_v15, %v618_v13  ;;  %551 = vst [vmem:[%s1014_s11 + $0x60] sm:$0xff] %v460_v16  ;;  %v581_v20 = vadd.f32 %v854_v1, %v580_v14  ;;  %567 = vst [vmem:[%s1014_s11 + $0xe0] sm:$0xff] %v524_v17  ;;  %v620_v24 = vmul.f32 %v460_v16, %v460_v16 }
 0x108   : > { %v858_v21 = vpop.f32.mrf.mxu0  ;;  %v1083_v22 = vpop.f32.mrf.mxu1  ;;  %v636_v14 = vmul.f32 %v524_v17, %v524_v17 }
 0x109   : > { %v582_v23 = vadd.f32 %v581_v20, %v460_v16  ;;  %v650_v26 = vadd.f32 %v649_v19, %v619_v18  ;;  %554 = vst [vmem:[%s1014_s11 + $0x78] sm:$0xff] %v858_v21  ;;  %570 = vst [vmem:[%s1014_s11 + $0xf8] sm:$0xff] %v1083_v22  ;;  %v623_v39 = vmul.f32 %v858_v21, %v858_v21 }
 0x10a   : > { %v463_v28 = vpop.f32.mrf.mxu0  ;;  %v527_v30 = vpop.f32.mrf.mxu1  ;;  %v638_v19 = vmul.f32 %v1076_v12, %v1076_v12 }
 0x10b   : > { %v651_v32 = vadd.f32 %v650_v26, %v620_v24  ;;  %552 = vst [vmem:[%s1014_s11 + $0x68] sm:$0xff] %v463_v28  ;;  %v583_v33 = vadd.f32 %v582_v23, %v463_v28  ;;  %v621_v34 = vmul.f32 %v463_v28, %v463_v28  ;;  %568 = vst [vmem:[%s1014_s11 + $0xe8] sm:$0xff] %v527_v30 }
 0x10d   : > { %v584_v37 = vadd.f32 %v857_v11, %v583_v33  ;;  %v652_v38 = vadd.f32 %v651_v32, %v621_v34 }
 0x10f   : > { %v585_v40 = vadd.f32 %v858_v21, %v584_v37  ;;  %v653_v42 = vadd.f32 %v652_v38, %v622_v35  ;;  %v639_v21 = vmul.f32 %v1083_v22, %v1083_v22 }
 0x111   : > { %v654_v44 = vadd.f32 %v653_v42, %v623_v39  ;;  %v586_v45 = vadd.f32 %v585_v40, %v1021_v27 }
 0x113   : > { %v587_v47 = vadd.f32 %v586_v45, %v1031_v31  ;;  %v655_v49 = vadd.f32 %v654_v44, %v624_v43 }
 0x115   : > { %v588_v52 = vadd.f32 %v1016_v25, %v587_v47  ;;  %v656_v53 = vadd.f32 %v655_v49, %v625_v48  ;;  %v630_v25 = vmul.f32 %v1036_v36, %v1036_v36 }
 0x117   : > { %v657_v55 = vadd.f32 %v656_v53, %v626_v50  ;;  %v589_v57 = vadd.f32 %v1026_v29, %v588_v52  ;;  %v631_v29 = vmul.f32 %v1046_v46, %v1046_v46 }
 0x119   : > { %v590_v27 = vadd.f32 %v589_v57, %v1041_v41  ;;  %v658_v59 = vadd.f32 %v657_v55, %v627_v54 }
 0x11b   : > { %v659_v31 = vadd.f32 %v658_v59, %v628_v58  ;;  %v591_v60 = vadd.f32 %v590_v27, %v1051_v51 }
 0x11d   : > { %v592_v63 = vadd.f32 %v1036_v36, %v591_v60  ;;  %v660_v0 = vadd.f32 %v659_v31, %v629_v62  ;;  %v634_v36 = vmul.f32 %v1056_v56, %v1056_v56 }
 0x11f   : > { %v661_v1 = vadd.f32 %v660_v0, %v630_v25  ;;  %v593_v3 = vadd.f32 %v1046_v46, %v592_v63  ;;  %v635_v46 = vmul.f32 %v1066_v2, %v1066_v2 }
 0x121   : > { %v594_v41 = vadd.f32 %v593_v3, %v1061_v61  ;;  %v662_v5 = vadd.f32 %v661_v1, %v631_v29 }
 0x123   : > { %v663_v6 = vadd.f32 %v662_v5, %v632_v4  ;;  %v595_v51 = vadd.f32 %v594_v41, %v1071_v7  ;;  %v637_v7 = vmul.f32 %v527_v30, %v527_v30 }
 0x125   : > { %v596_v9 = vadd.f32 %v1056_v56, %v595_v51  ;;  %v664_v10 = vadd.f32 %v663_v6, %v633_v8 }
 0x127   : > { %v665_v11 = vadd.f32 %v664_v10, %v634_v36  ;;  %v597_v61 = vadd.f32 %v1066_v2, %v596_v9 }
 0x129   : > { %v598_v13 = vadd.f32 %v597_v61, %v524_v17  ;;  %v666_v15 = vadd.f32 %v665_v11, %v635_v46 }
 0x12b   : > { %v667_v16 = vadd.f32 %v666_v15, %v636_v14  ;;  %v599_v18 = vadd.f32 %v598_v13, %v527_v30 }
 0x12d   : > { %v600_v56 = vadd.f32 %v1076_v12, %v599_v18  ;;  %v668_v20 = vadd.f32 %v667_v16, %v637_v7 }
 0x12f   : > { %v601_v23 = vadd.f32 %v1083_v22, %v600_v56  ;;  %v669_v24 = vadd.f32 %v668_v20, %v638_v19 }
 0x131   : > { %v602_v2 = vrot.slane %v601_v23, 4  ;;  %v670_v26 = vadd.f32 %v669_v24, %v639_v21 }
 0x133   : > { %v603_v17 = vadd.f32 %v602_v2, %v601_v23  ;;  %v671_v28 = vrot.slane %v670_v26, 4 }
 0x135   : > { %v604_v32 = vrot.slane %v603_v17, 2  ;;  %v672_v33 = vadd.f32 %v671_v28, %v670_v26 }
 0x137   : > { %v605_v30 = vadd.f32 %v604_v32, %v603_v17  ;;  %v673_v34 = vrot.slane %v672_v33, 2 }
 0x139   : > { %v606_v35 = vrot.slane %v605_v30, 1  ;;  %v674_v37 = vadd.f32 %v673_v34, %v672_v33 }
 0x13b   : > { %v675_v12 = vrot.slane %v674_v37, 1  ;;  %v607_v22 = vadd.f32 %v606_v35, %v605_v30 }
 0x13d   : > { %v676_v38 = vadd.f32 %v675_v12, %v674_v37 }
 0x13f   : > { %v678_v39 = vsel %vm677_vm0, %v607_v22, %v676_v38 }
 0x140   : > { %679 = vst [vmem:[%s184_s17] sm:$0x3] %v678_v39 }
 0x141 PF: > { %s14_s12 = sadd.s32 1, %s929_s12  }
 0x142   : > { %p11_p5 = scmp.ge.s32.totalorder %s14_s12, 4  }
 0x144   :  { %13 = sbr.rel (!%p11_p5) target bundleno = 1 (0x1), region = 70 }

// kernel: residual_block_forward.8
= control target key start
LH: loop header
LB: loop body
LE: loop exit
PB: predicated region body
PF: predicated region fallthrough
CT: control target
= control target key end

     0   :  { %s740_s12 = smov 0   ;;  %s887_s0 = inlined_call_operand.vmem [shape: f32[512,128], index: 0, kind: input, shape index: {}]   ;;  %s888_s1 = inlined_call_operand.vmem [shape: f32[1,128], index: 1, kind: input, shape index: {}]   ;;  %s889_s2 = inlined_call_operand.vmem [shape: f32[1,128], index: 2, kind: input, shape index: {}]   ;;  %s890_s3 = inlined_call_operand.vmem [shape: bf16[512,128], index: 3, kind: output, shape index: {}]  }
   0x1 LB: > { %s532_s13 = sadd.s32 4294967295, %s718_s12   ;;  %p536_p0 = scmp.ge.s32.totalorder %s718_s12, 1  ;;  %s718_s12 = sphi %s740_s12, %s13_s12  }
   0x2   : > { %p138_p1 = scmp.lt.s32.totalorder %s718_s12, 3 }
   0x4   : > { %p139_p2 = pnand %p536_p0, %p138_p1 }
   0x5   : > { %s537_s14 = sshll.u32 (!%p139_p2), %s532_s13, 5 }
   0x6   : > { %142 = sbr.rel (%p139_p2) target bundleno = 49 (0x31), region = 32  ;;  %p163_p3 = scmp.lt.s32.totalorder (!%p139_p2), %s537_s14, 63 }
   0xb   : > { %s892_s14 = smov (!%p163_p3, %s537_s14), 63  ;;  %v754_v0 = vld [vmem:[%s888_s1] ss:$0 sm:$0xff] }
   0xc   : > { %s538_s15 = sshll.u32 %s892_s14, 3  ;;  %v764_v1 = vld [vmem:[%s889_s2] ss:$0 sm:$0xff]  ;;  %s540_s23 = sshll.u32 %s892_s14, 2 }
   0xd   : > { %s759_s20 = scalar_lea.vmem %s887_s0, %s538_s15  ;;  %s796_s26 = scalar_lea.vmem %s890_s3, %s540_s23 }
   0xe   : > { %v174_v2 = vld [vmem:[%s759_s20] sm:$0xff]  ;;  %v175_v3 = vld [vmem:[%s759_s20 + $0x8] sm:$0xff]  ;;  %v176_v4 = vld [vmem:[%s759_s20 + $0x10] sm:$0xff] }
   0xf   : > { %v213_v5 = vmul.f32 %v754_v0, %v174_v2  ;;  %v214_v6 = vmul.f32 %v754_v0, %v175_v3  ;;  %v177_v7 = vld [vmem:[%s759_s20 + $0x18] sm:$0xff]  ;;  %v215_v8 = vmul.f32 %v754_v0, %v176_v4  ;;  %v178_v9 = vld [vmem:[%s759_s20 + $0x20] sm:$0xff]  ;;  %v179_v10 = vld [vmem:[%s759_s20 + $0x28] sm:$0xff] }
  0x10   : > { %v216_v11 = vmul.f32 %v754_v0, %v177_v7  ;;  %v217_v12 = vmul.f32 %v754_v0, %v178_v9  ;;  %v218_v13 = vmul.f32 %v754_v0, %v179_v10  ;;  %v180_v14 = vld [vmem:[%s759_s20 + $0x30] sm:$0xff]  ;;  %v181_v15 = vld [vmem:[%s759_s20 + $0x38] sm:$0xff]  ;;  %v182_v24 = vld [vmem:[%s759_s20 + $0x40] sm:$0xff] }
  0x11   : > { %v252_v16 = vadd.f32 %v764_v1, %v213_v5  ;;  %v253_v17 = vadd.f32 %v764_v1, %v214_v6  ;;  %v254_v18 = vadd.f32 %v764_v1, %v215_v8  ;;  %v219_v19 = vmul.f32 %v754_v0, %v180_v14  ;;  %v183_v25 = vld [vmem:[%s759_s20 + $0x48] sm:$0xff]  ;;  %v184_v30 = vld [vmem:[%s759_s20 + $0x50] sm:$0xff]  ;;  %v185_v35 = vld [vmem:[%s759_s20 + $0x58] sm:$0xff] }
  0x12   : > { %v255_v20 = vadd.f32 %v764_v1, %v216_v11  ;;  %v256_v21 = vadd.f32 %v764_v1, %v217_v12  ;;  %v257_v22 = vadd.f32 %v764_v1, %v218_v13  ;;  %v220_v23 = vmul.f32 %v754_v0, %v181_v15  ;;  %v186_v36 = vld [vmem:[%s759_s20 + $0x60] sm:$0xff]  ;;  %v187_v41 = vld [vmem:[%s759_s20 + $0x68] sm:$0xff]  ;;  %v188_v42 = vld [vmem:[%s759_s20 + $0x70] sm:$0xff] }
  0x13   : > { %v284_v26 = vmax.f32 %v252_v16, 0.0  ;;  %v285_v27 = vmax.f32 %v253_v17, 0.0  ;;  %v286_v28 = vmax.f32 %v254_v18, 0.0  ;;  %v258_v29 = vadd.f32 %v764_v1, %v219_v19  ;;  %v189_v51 = vld [vmem:[%s759_s20 + $0x78] sm:$0xff]  ;;  %v190_v56 = vld [vmem:[%s759_s20 + $0x80] sm:$0xff]  ;;  %v191_v61 = vld [vmem:[%s759_s20 + $0x88] sm:$0xff] }
  0x14   : > { %v287_v31 = vmax.f32 %v255_v20, 0.0  ;;  %v288_v32 = vmax.f32 %v256_v21, 0.0  ;;  %v289_v33 = vmax.f32 %v257_v22, 0.0  ;;  %v259_v34 = vadd.f32 %v764_v1, %v220_v23  ;;  %v192_v4 = vld [vmem:[%s759_s20 + $0x90] sm:$0xff]  ;;  %v193_v5 = vld [vmem:[%s759_s20 + $0x98] sm:$0xff]  ;;  %v194_v10 = vld [vmem:[%s759_s20 + $0xa0] sm:$0xff] }
  0x15   : > { %v612_v37 = vpack.c.bf16 %v285_v27, %v284_v26  ;;  %v290_v38 = vmax.f32 %v258_v29, 0.0  ;;  %v221_v39 = vmul.f32 %v754_v0, %v182_v24  ;;  %v222_v40 = vmul.f32 %v754_v0, %v183_v25  ;;  %v195_v15 = vld [vmem:[%s759_s20 + $0xa8] sm:$0xff]  ;;  %v196_v20 = vld [vmem:[%s759_s20 + $0xb0] sm:$0xff]  ;;  %v197_v25 = vld [vmem:[%s759_s20 + $0xb8] sm:$0xff] }
  0x16   : > { %v617_v43 = vpack.c.bf16 %v287_v31, %v286_v28  ;;  %v622_v44 = vpack.c.bf16 %v289_v33, %v288_v32  ;;  %v291_v45 = vmax.f32 %v259_v34, 0.0  ;;  %v223_v46 = vmul.f32 %v754_v0, %v184_v30  ;;  %v198_v30 = vld [vmem:[%s759_s20 + $0xc0] sm:$0xff] }
  0x17   : > { %613 = vst [vmem:[%s796_s26] sm:$0xff] %v612_v37   ;;  %v260_v47 = vadd.f32 %v764_v1, %v221_v39  ;;  %v261_v48 = vadd.f32 %v764_v1, %v222_v40  ;;  %v224_v49 = vmul.f32 %v754_v0, %v185_v35  ;;  %v225_v50 = vmul.f32 %v754_v0, %v186_v36  ;;  %v199_v35 = vld [vmem:[%s759_s20 + $0xc8] sm:$0xff]  ;;  %v200_v40 = vld [vmem:[%s759_s20 + $0xd0] sm:$0xff] }
  0x18   : > { %689 = vst [vmem:[%s796_s26 + $0x8] sm:$0xff] %v617_v43   ;;  %690 = vst [vmem:[%s796_s26 + $0x10] sm:$0xff] %v622_v44   ;;  %v627_v52 = vpack.c.bf16 %v291_v45, %v290_v38  ;;  %v262_v53 = vadd.f32 %v764_v1, %v223_v46  ;;  %v226_v54 = vmul.f32 %v754_v0, %v187_v41  ;;  %v201_v41 = vld [vmem:[%s759_s20 + $0xd8] sm:$0xff]  ;;  %v202_v46 = vld [vmem:[%s759_s20 + $0xe0] sm:$0xff] }
  0x19   : > { %v227_v55 = vmul.f32 %v754_v0, %v188_v42  ;;  %v292_v57 = vmax.f32 %v260_v47, 0.0  ;;  %v293_v58 = vmax.f32 %v261_v48, 0.0  ;;  %v263_v59 = vadd.f32 %v764_v1, %v224_v49 }
  0x1a   : > { %v264_v60 = vadd.f32 %v764_v1, %v225_v50  ;;  %691 = vst [vmem:[%s796_s26 + $0x18] sm:$0xff] %v627_v52   ;;  %v294_v62 = vmax.f32 %v262_v53, 0.0  ;;  %v265_v63 = vadd.f32 %v764_v1, %v226_v54  ;;  %v228_v2 = vmul.f32 %v754_v0, %v189_v51  ;;  %v203_v51 = vld [vmem:[%s759_s20 + $0xe8] sm:$0xff] }
  0x1b   : > { %v266_v3 = vadd.f32 %v764_v1, %v227_v55  ;;  %v632_v6 = vpack.c.bf16 %v293_v58, %v292_v57  ;;  %v295_v7 = vmax.f32 %v263_v59, 0.0  ;;  %v229_v9 = vmul.f32 %v754_v0, %v190_v56  ;;  %v204_v56 = vld [vmem:[%s759_s20 + $0xf0] sm:$0xff] }
  0x1c   : > { %v296_v8 = vmax.f32 %v264_v60, 0.0  ;;  %v297_v11 = vmax.f32 %v265_v63, 0.0  ;;  %v267_v12 = vadd.f32 %v764_v1, %v228_v2  ;;  %v230_v14 = vmul.f32 %v754_v0, %v191_v61  ;;  %v205_v61 = vld [vmem:[%s759_s20 + $0xf8] sm:$0xff] }
  0x1d   : > { %v298_v13 = vmax.f32 %v266_v3, 0.0  ;;  %692 = vst [vmem:[%s796_s26 + $0x20] sm:$0xff] %v632_v6   ;;  %v637_v16 = vpack.c.bf16 %v295_v7, %v294_v62  ;;  %v268_v17 = vadd.f32 %v764_v1, %v229_v9  ;;  %v231_v18 = vmul.f32 %v754_v0, %v192_v4 }
  0x1e   : > { %v232_v19 = vmul.f32 %v754_v0, %v193_v5  ;;  %v642_v21 = vpack.c.bf16 %v297_v11, %v296_v8  ;;  %v299_v22 = vmax.f32 %v267_v12, 0.0  ;;  %v269_v23 = vadd.f32 %v764_v1, %v230_v14 }
  0x1f   : > { %v233_v24 = vmul.f32 %v754_v0, %v194_v10  ;;  %693 = vst [vmem:[%s796_s26 + $0x28] sm:$0xff] %v637_v16   ;;  %v300_v26 = vmax.f32 %v268_v17, 0.0  ;;  %v270_v27 = vadd.f32 %v764_v1, %v231_v18  ;;  %v234_v29 = vmul.f32 %v754_v0, %v195_v15 }
  0x20   : > { %v271_v28 = vadd.f32 %v764_v1, %v232_v19  ;;  %694 = vst [vmem:[%s796_s26 + $0x30] sm:$0xff] %v642_v21   ;;  %v647_v31 = vpack.c.bf16 %v299_v22, %v298_v13  ;;  %v301_v32 = vmax.f32 %v269_v23, 0.0  ;;  %v235_v34 = vmul.f32 %v754_v0, %v196_v20 }
  0x21   : > { %v272_v33 = vadd.f32 %v764_v1, %v233_v24  ;;  %v302_v36 = vmax.f32 %v270_v27, 0.0  ;;  %v273_v38 = vadd.f32 %v764_v1, %v234_v29  ;;  %v236_v39 = vmul.f32 %v754_v0, %v197_v25 }
  0x22   : > { %v303_v37 = vmax.f32 %v271_v28, 0.0  ;;  %695 = vst [vmem:[%s796_s26 + $0x38] sm:$0xff] %v647_v31   ;;  %v652_v42 = vpack.c.bf16 %v301_v32, %v300_v26  ;;  %v274_v44 = vadd.f32 %v764_v1, %v235_v34  ;;  %v237_v45 = vmul.f32 %v754_v0, %v198_v30 }
  0x23   : > { %v304_v43 = vmax.f32 %v272_v33, 0.0  ;;  %v305_v48 = vmax.f32 %v273_v38, 0.0  ;;  %v275_v49 = vadd.f32 %v764_v1, %v236_v39  ;;  %v238_v50 = vmul.f32 %v754_v0, %v199_v35 }
  0x24   : > { %v657_v47 = vpack.c.bf16 %v303_v37, %v302_v36  ;;  %696 = vst [vmem:[%s796_s26 + $0x40] sm:$0xff] %v652_v42   ;;  %v306_v52 = vmax.f32 %v274_v44, 0.0  ;;  %v276_v53 = vadd.f32 %v764_v1, %v237_v45  ;;  %v239_v54 = vmul.f32 %v754_v0, %v200_v40 }
  0x25   : > { %v240_v55 = vmul.f32 %v754_v0, %v201_v41  ;;  %v662_v57 = vpack.c.bf16 %v305_v48, %v304_v43  ;;  %v307_v58 = vmax.f32 %v275_v49, 0.0  ;;  %v277_v59 = vadd.f32 %v764_v1, %v238_v50 }
  0x26   : > { %697 = vst [vmem:[%s796_s26 + $0x48] sm:$0xff] %v657_v47   ;;  %v241_v60 = vmul.f32 %v754_v0, %v202_v46  ;;  %v308_v62 = vmax.f32 %v276_v53, 0.0  ;;  %v278_v63 = vadd.f32 %v764_v1, %v239_v54  ;;  %v242_v3 = vmul.f32 %v754_v0, %v203_v51 }
  0x27   : > { %v279_v2 = vadd.f32 %v764_v1, %v240_v55  ;;  %698 = vst [vmem:[%s796_s26 + $0x50] sm:$0xff] %v662_v57   ;;  %v667_v4 = vpack.c.bf16 %v307_v58, %v306_v52  ;;  %v309_v5 = vmax.f32 %v277_v59, 0.0  ;;  %v243_v7 = vmul.f32 %v754_v0, %v204_v56 }
  0x28   : > { %v280_v6 = vadd.f32 %v764_v1, %v241_v60  ;;  %v310_v8 = vmax.f32 %v278_v63, 0.0  ;;  %v281_v10 = vadd.f32 %v764_v1, %v242_v3  ;;  %v244_v11 = vmul.f32 %v754_v0, %v205_v61 }
  0x29   : > { %v311_v9 = vmax.f32 %v279_v2, 0.0  ;;  %699 = vst [vmem:[%s796_s26 + $0x58] sm:$0xff] %v667_v4   ;;  %v672_v12 = vpack.c.bf16 %v309_v5, %v308_v62  ;;  %v282_v14 = vadd.f32 %v764_v1, %v243_v7 }
  0x2a   : > { %v312_v13 = vmax.f32 %v280_v6, 0.0  ;;  %v313_v16 = vmax.f32 %v281_v10, 0.0  ;;  %v283_v17 = vadd.f32 %v764_v1, %v244_v11 }
  0x2b   : > { %v677_v15 = vpack.c.bf16 %v311_v9, %v310_v8  ;;  %700 = vst [vmem:[%s796_s26 + $0x60] sm:$0xff] %v672_v12   ;;  %v314_v18 = vmax.f32 %v282_v14, 0.0 }
  0x2c   : > { %v682_v19 = vpack.c.bf16 %v313_v16, %v312_v13  ;;  %v315_v20 = vmax.f32 %v283_v17, 0.0 }
  0x2d   : > { %701 = vst [vmem:[%s796_s26 + $0x68] sm:$0xff] %v677_v15  }
  0x2e   : > { %702 = vst [vmem:[%s796_s26 + $0x70] sm:$0xff] %v682_v19   ;;  %v687_v21 = vpack.c.bf16 %v315_v20, %v314_v18 }
  0x30   : > { %703 = vst [vmem:[%s796_s26 + $0x78] sm:$0xff] %v687_v21  }
  0x31 PF: > { %s13_s12 = sadd.s32 1, %s718_s12  }
  0x32   : > { %p10_p4 = scmp.ge.s32.totalorder %s13_s12, 4  }
  0x34   :  { %12 = sbr.rel (!%p10_p4) target bundleno = 1 (0x1), region = 62 }

// kernel: residual_block_forward.9
= control target key start
LH: loop header
LB: loop body
LE: loop exit
PB: predicated region body
PF: predicated region fallthrough
CT: control target
= control target key end

     0   :  { %s1660_s12 = smov 0   ;;  %s1893_s0 = inlined_call_operand.vmem [shape: bf16[512,384], index: 0, kind: input, shape index: {}]   ;;  %s1894_s1 = inlined_call_operand.vmem [shape: bf16[384,128], index: 1, kind: input, shape index: {}]   ;;  %s1895_s2 = inlined_call_operand.vmem [shape: f32[512,128], index: 2, kind: output, shape index: {0}]   ;;  %s1896_s3 = inlined_call_operand.vmem [shape: f32[2,2,128], index: 3, kind: output, shape index: {1}]  }
   0x1 LB: > { %s1666_s13 = sadd.s32 4294967295, %s1638_s12   ;;  %p1255_p0 = scmp.ge.s32.totalorder %s1638_s12, 1  ;;  %s1638_s12 = sphi %s1660_s12, %s14_s12  }
   0x2   : > { %p142_p1 = scmp.lt.s32.totalorder %s1638_s12, 3 }
   0x4   : > { %p143_p2 = pnand %p1255_p0, %p142_p1 }
   0x5   : > { %s1256_s16 = sshll.u32 (!%p143_p2), %s1666_s13, 5  ;;  %p184_p4 = scmp.lt.s32.totalorder (!%p143_p2), %s1666_s13, 1 }
   0x6   : > { %146 = sbr.rel (%p143_p2) target bundleno = 369 (0x171), region = 28  ;;  %p172_p3 = scmp.lt.s32.totalorder (!%p143_p2), %s1256_s16, 63 }
   0xb   : > { %v1544_v0 = vld [vmem:[%s1894_s1 + $0x78] sm:$0xff]   ;;  %v1546_v2 = vld [vmem:[%s1894_s1 + $0x70] sm:$0xff]   ;;  %v1548_v4 = vld [vmem:[%s1894_s1 + $0x68] sm:$0xff]   ;;  %s1898_s16 = smov (!%p172_p3, %s1256_s16), 63  ;;  %s1900_s13 = smov (!%p184_p4, %s1666_s13), 1  ;;  %vm1161_vm0 = vcmask 1040384  }
   0xc   : > { %v1545_v1 = vld [vmem:[%s1894_s1 + $0x38] sm:$0xff]   ;;  %1335 = vmatprep.subr.bf16.mxu0 %v1544_v0  ;;  %1519 = vmatprep.subr.bf16.mxu1 %v1544_v0  ;;  %v1547_v3 = vld [vmem:[%s1894_s1 + $0x30] sm:$0xff]   ;;  %v1549_v5 = vld [vmem:[%s1894_s1 + $0x28] sm:$0xff]   ;;  %s1535_s29 = smul.u32 12, %s1898_s16 }
   0xd   : > { %1336 = vmatpush3.bf16.msra.mxu0 %v1545_v1  ;;  %1527 = vmatpush3.bf16.msra.mxu1 %v1545_v1  ;;  %v1550_v6 = vld [vmem:[%s1894_s1 + $0x60] sm:$0xff]   ;;  %v1552_v8 = vld [vmem:[%s1894_s1 + $0x58] sm:$0xff]   ;;  %v1554_v10 = vld [vmem:[%s1894_s1 + $0x50] sm:$0xff]  }
   0xe   : > { %1337 = vmatprep.subr.bf16.mxu0 %v1546_v2  ;;  %1520 = vmatprep.subr.bf16.mxu1 %v1546_v2  ;;  %v1551_v7 = vld [vmem:[%s1894_s1 + $0x20] sm:$0xff]   ;;  %s1704_s9 = scalar_lea.vmem %s1893_s0, %s1535_s29  ;;  %v1553_v9 = vld [vmem:[%s1894_s1 + $0x18] sm:$0xff]   ;;  %v1555_v13 = vld [vmem:[%s1894_s1 + $0x10] sm:$0xff]  }
   0xf   : > { %v1562_v11 = vld [vmem:[%s1704_s9 + $0x4] ss:$12 sps:$4 sm:$0xff]   ;;  %v1556_v14 = vld [vmem:[%s1894_s1 + $0x48] sm:$0xff]   ;;  %v1566_v18 = vld [vmem:[%s1894_s1 + $0xb8] sm:$0xff]  }
  0x10   : > { %v1565_v12 = vld [vmem:[%s1704_s9 + $0x124] ss:$12 sps:$4 sm:$0xff]   ;;  %733 = vmatprep.mubr.bf16.mxu0 %v1562_v11  ;;  %v1557_v15 = vld [vmem:[%s1894_s1 + $0x8] sm:$0xff]   ;;  %v1576_v28 = vld [vmem:[%s1704_s9 + $0x34] ss:$12 sps:$4 sm:$0xff]  }
  0x11   : > { %1338 = vmatpush3.bf16.msra.mxu0 %v1547_v3  ;;  %1528 = vmatpush3.bf16.msra.mxu1 %v1547_v3  ;;  %v1558_v16 = vld [vmem:[%s1894_s1 + $0x40] sm:$0xff]   ;;  %v1568_v21 = vld [vmem:[%s1704_s9 + $0x1c] ss:$12 sps:$4 sm:$0xff]   ;;  %v1567_v22 = vld [vmem:[%s1894_s1 + $0xb0] sm:$0xff]  }
  0x12   : > { %1339 = vmatprep.subr.bf16.mxu0 %v1548_v4  ;;  %1521 = vmatprep.subr.bf16.mxu1 %v1548_v4  ;;  %v1559_v17 = vld [vmem:[%s1894_s1] sm:$0xff]   ;;  %v1570_v23 = vld [vmem:[%s1704_s9 + $0x13c] ss:$12 sps:$4 sm:$0xff]   ;;  %v1583_v33 = vld [vmem:[%s1894_s1 + $0x90] sm:$0xff]  }
  0x13   : > { %829 = vmatprep.mubr.bf16.mxu1 %v1565_v12  ;;  %v1560_v19 = vld [vmem:[%s1704_s9] ss:$12 sps:$4 sm:$0xff]   ;;  %v1572_v24 = vld [vmem:[%s1704_s9 + $0x18] ss:$12 sps:$4 sm:$0xff]   ;;  %v1580_v31 = vld [vmem:[%s1704_s9 + $0x30] ss:$12 sps:$4 sm:$0xff]  }
  0x14   : > { %v1563_v20 = vld [vmem:[%s1704_s9 + $0x120] ss:$12 sps:$4 sm:$0xff]   ;;  %v1573_v26 = vld [vmem:[%s1704_s9 + $0x138] ss:$12 sps:$4 sm:$0xff]   ;;  %v1581_v32 = vld [vmem:[%s1704_s9 + $0x150] ss:$12 sps:$4 sm:$0xff]  }
  0x15   : > { %1340 = vmatpush3.bf16.msra.mxu0 %v1549_v5  ;;  %1529 = vmatpush3.bf16.msra.mxu1 %v1549_v5  ;;  %v1574_v25 = vld [vmem:[%s1894_s1 + $0xa8] sm:$0xff]   ;;  %v1575_v27 = vld [vmem:[%s1894_s1 + $0xa0] sm:$0xff]   ;;  %v1582_v30 = vld [vmem:[%s1894_s1 + $0x98] sm:$0xff]  }
  0x16   : > { %1341 = vmatprep.subr.bf16.mxu0 %v1550_v6  ;;  %1522 = vmatprep.subr.bf16.mxu1 %v1550_v6  ;;  %v1578_v29 = vld [vmem:[%s1704_s9 + $0x154] ss:$12 sps:$4 sm:$0xff]   ;;  %v1584_v34 = vld [vmem:[%s1704_s9 + $0x4c] ss:$12 sps:$4 sm:$0xff]   ;;  %v1592_v39 = vld [vmem:[%s1704_s9 + $0x64] ss:$12 sps:$4 sm:$0xff]  }
  0x17   : > { %v1586_v35 = vld [vmem:[%s1704_s9 + $0x16c] ss:$12 sps:$4 sm:$0xff]   ;;  %v1588_v37 = vld [vmem:[%s1704_s9 + $0x48] ss:$12 sps:$4 sm:$0xff]   ;;  %v1591_v40 = vld [vmem:[%s1894_s1 + $0x80] sm:$0xff]  }
  0x18   : > { %v1590_v36 = vld [vmem:[%s1894_s1 + $0x88] sm:$0xff]   ;;  %v1599_v45 = vld [vmem:[%s1704_s9 + $0x38] ss:$12 sps:$4 sm:$0xff]   ;;  %v1601_v47 = vld [vmem:[%s1704_s9 + $0x50] ss:$12 sps:$4 sm:$0xff]  }
  0x19   : > { %1342 = vmatpush3.bf16.msra.mxu0 %v1551_v7  ;;  %1530 = vmatpush3.bf16.msra.mxu1 %v1551_v7  ;;  %v1589_v38 = vld [vmem:[%s1704_s9 + $0x168] ss:$12 sps:$4 sm:$0xff]   ;;  %v1595_v42 = vld [vmem:[%s1704_s9 + $0x60] ss:$12 sps:$4 sm:$0xff]   ;;  %v1600_v46 = vld [vmem:[%s1704_s9 + $0x78] ss:$12 sps:$4 sm:$0xff]  }
  0x1a   : > { %1343 = vmatprep.subr.bf16.mxu0 %v1552_v8  ;;  %1523 = vmatprep.subr.bf16.mxu1 %v1552_v8  ;;  %v1594_v41 = vld [vmem:[%s1704_s9 + $0x8] ss:$12 sps:$4 sm:$0xff]   ;;  %v1596_v43 = vld [vmem:[%s1704_s9 + $0x20] ss:$12 sps:$4 sm:$0xff]   ;;  %v1605_v50 = vld [vmem:[%s1704_s9 + $0x90] ss:$12 sps:$4 sm:$0xff]  }
  0x1b   : > { %v1597_v44 = vld [vmem:[%s1704_s9 + $0x7c] ss:$12 sps:$4 sm:$0xff]   ;;  %v1602_v48 = vld [vmem:[%s1704_s9 + $0x94] ss:$12 sps:$4 sm:$0xff]   ;;  %v1607_v52 = vld [vmem:[%s1704_s9 + $0xac] ss:$12 sps:$4 sm:$0xff]  }
  0x1c   : > { %v1604_v49 = vld [vmem:[%s1704_s9 + $0x68] ss:$12 sps:$4 sm:$0xff]   ;;  %v1606_v51 = vld [vmem:[%s1704_s9 + $0x80] ss:$12 sps:$4 sm:$0xff]   ;;  %v1609_v53 = vld [vmem:[%s1704_s9 + $0x98] ss:$12 sps:$4 sm:$0xff]  }
  0x1d   : > { %1344 = vmatpush3.bf16.msra.mxu0 %v1553_v9  ;;  %1531 = vmatpush3.bf16.msra.mxu1 %v1553_v9  ;;  %v1610_v54 = vld [vmem:[%s1704_s9 + $0xa8] ss:$12 sps:$4 sm:$0xff]   ;;  %v1611_v55 = vld [vmem:[%s1704_s9 + $0xb0] ss:$12 sps:$4 sm:$0xff]   ;;  %v1615_v58 = vld [vmem:[%s1704_s9 + $0xc0] ss:$12 sps:$4 sm:$0xff]  }
  0x1e   : > { %1345 = vmatprep.subr.bf16.mxu0 %v1554_v10  ;;  %1524 = vmatprep.subr.bf16.mxu1 %v1554_v10  ;;  %v1612_v56 = vld [vmem:[%s1704_s9 + $0xc4] ss:$12 sps:$4 sm:$0xff]   ;;  %v1614_v57 = vld [vmem:[%s1704_s9 + $0xc8] ss:$12 sps:$4 sm:$0xff]   ;;  %v1616_v59 = vld [vmem:[%s1704_s9 + $0xe0] ss:$12 sps:$4 sm:$0xff]  }
  0x1f   : > { %v1617_v60 = vld [vmem:[%s1704_s9 + $0xdc] ss:$12 sps:$4 sm:$0xff]   ;;  %v1619_v61 = vld [vmem:[%s1704_s9 + $0xf8] ss:$12 sps:$4 sm:$0xff]   ;;  %v1622_v0 = vld [vmem:[%s1704_s9 + $0xf4] ss:$12 sps:$4 sm:$0xff]  }
  0x20   : > { %v1620_v62 = vld [vmem:[%s1704_s9 + $0xd8] ss:$12 sps:$4 sm:$0xff]   ;;  %v1621_v63 = vld [vmem:[%s1704_s9 + $0x110] ss:$12 sps:$4 sm:$0xff]   ;;  %v1624_v1 = vld [vmem:[%s1704_s9 + $0x128] ss:$12 sps:$4 sm:$0xff]  }
  0x21   : > { %1346 = vmatpush3.bf16.msra.mxu0 %v1555_v13  ;;  %1532 = vmatpush3.bf16.msra.mxu1 %v1555_v13  ;;  %v1625_v2 = vld [vmem:[%s1704_s9 + $0xf0] ss:$12 sps:$4 sm:$0xff]   ;;  %v1626_v3 = vld [vmem:[%s1704_s9 + $0x140] ss:$12 sps:$4 sm:$0xff]   ;;  %v1629_v5 = vld [vmem:[%s1704_s9 + $0x158] ss:$12 sps:$4 sm:$0xff]  }
  0x22   : > { %1347 = vmatprep.subr.bf16.mxu0 %v1556_v14  ;;  %1525 = vmatprep.subr.bf16.mxu1 %v1556_v14  ;;  %v1627_v4 = vld [vmem:[%s1704_s9 + $0x10c] ss:$12 sps:$4 sm:$0xff]   ;;  %v1630_v6 = vld [vmem:[%s1704_s9 + $0x108] ss:$12 sps:$4 sm:$0xff]   ;;  %v1631_v7 = vld [vmem:[%s1704_s9 + $0x170] ss:$12 sps:$4 sm:$0xff]  }
  0x23   : > { %s1259_s9 = sshll.u32 %s1898_s16, 3  ;;  %s1260_s16 = sshll.u32 %s1900_s13, 1 }
  0x24   : > { %s1823_s22 = scalar_lea.vmem %s1895_s2, %s1259_s9  ;;  %s187_s25 = scalar_lea.vmem %s1896_s3, %s1260_s16 }
  0x25   : > { %1348 = vmatpush3.bf16.msra.mxu0 %v1557_v15  ;;  %1533 = vmatpush3.bf16.msra.mxu1 %v1557_v15 }
  0x26   : > { %1349 = vmatprep.subr.bf16.mxu0 %v1558_v16  ;;  %1526 = vmatprep.subr.bf16.mxu1 %v1558_v16 }
  0x29   : > { %1350 = vmatpush3.bf16.msra.mxu0 %v1559_v17  ;;  %1534 = vmatpush3.bf16.msra.mxu1 %v1559_v17 }
  0x2a   : > { %1471 = vmatprep.subr.bf16.mxu1 %v1566_v18 }
  0x2c   : > { %734 = vmatmul.mubr.bf16.vlgmr.msra.gmra.mxu0 %v1560_v19  ;;  %830 = vmatmul.mubr.bf16.vlgmr.msra.gmra.mxu1 %v1563_v20 }
  0x2d   : > { %1472 = vmatpush3.bf16.msra.mxu1 %v1566_v18  ;;  %741 = vmatprep.mubr.bf16.mxu0 %v1568_v21 }
  0x2e   : > { %1473 = vmatprep.subr.bf16.mxu1 %v1567_v22  ;;  %837 = vmatprep.mubr.bf16.mxu1 %v1570_v23 }
  0x31   : > { %1474 = vmatpush3.bf16.msra.mxu1 %v1567_v22 }
  0x32   : > { %1475 = vmatprep.subr.bf16.mxu1 %v1574_v25 }
  0x34   : > { %742 = vmatmul.mubr.bf16.gmra.mxu0 %v1572_v24  ;;  %838 = vmatmul.mubr.bf16.gmra.mxu1 %v1573_v26 }
  0x35   : > { %1476 = vmatpush3.bf16.msra.mxu1 %v1574_v25  ;;  %749 = vmatprep.mubr.bf16.mxu0 %v1576_v28 }
  0x36   : > { %1477 = vmatprep.subr.bf16.mxu1 %v1575_v27  ;;  %845 = vmatprep.mubr.bf16.mxu1 %v1578_v29 }
  0x39   : > { %1478 = vmatpush3.bf16.msra.mxu1 %v1575_v27 }
  0x3a   : > { %1479 = vmatprep.subr.bf16.mxu1 %v1582_v30 }
  0x3c   : > { %750 = vmatmul.mubr.bf16.gmra.mxu0 %v1580_v31  ;;  %846 = vmatmul.mubr.bf16.gmra.mxu1 %v1581_v32 }
  0x3d   : > { %1480 = vmatpush3.bf16.msra.mxu1 %v1582_v30  ;;  %757 = vmatprep.mubr.bf16.mxu0 %v1584_v34 }
  0x3e   : > { %1481 = vmatprep.subr.bf16.mxu1 %v1583_v33  ;;  %853 = vmatprep.mubr.bf16.mxu1 %v1586_v35 }
  0x41   : > { %1482 = vmatpush3.bf16.msra.mxu1 %v1583_v33 }
  0x42   : > { %1483 = vmatprep.subr.bf16.mxu1 %v1590_v36 }
  0x44   : > { %758 = vmatmul.mubr.bf16.gmra.mxu0 %v1588_v37  ;;  %854 = vmatmul.mubr.bf16.gmra.mxu1 %v1589_v38 }
  0x45   : > { %1484 = vmatpush3.bf16.msra.mxu1 %v1590_v36  ;;  %765 = vmatprep.mubr.bf16.mxu0 %v1592_v39 }
  0x46   : > { %1485 = vmatprep.subr.bf16.mxu1 %v1591_v40  ;;  %1487 = vmatprep.mubr.bf16.mxu1 %v1594_v41 }
  0x49   : > { %1486 = vmatpush3.bf16.msra.mxu1 %v1591_v40 }
  0x4c   : > { %766 = vmatmul.mubr.bf16.gmra.mxu0 %v1595_v42  ;;  %1488 = vmatmul.mubr.bf16.vlgmr.msra.gmra.mxu1 %v1596_v43 }
  0x4d   : > { %773 = vmatprep.mubr.bf16.mxu0 %v1597_v44  ;;  %1491 = vmatprep.mubr.bf16.mxu1 %v1599_v45 }
  0x54   : > { %774 = vmatmul.mubr.bf16.gmra.mxu0 %v1600_v46  ;;  %1492 = vmatmul.mubr.bf16.gmra.mxu1 %v1601_v47 }
  0x55   : > { %781 = vmatprep.mubr.bf16.mxu0 %v1602_v48  ;;  %1495 = vmatprep.mubr.bf16.mxu1 %v1604_v49 }
  0x5c   : > { %782 = vmatmul.mubr.bf16.gmra.mxu0 %v1605_v50  ;;  %1496 = vmatmul.mubr.bf16.gmra.mxu1 %v1606_v51 }
  0x5d   : > { %789 = vmatprep.mubr.bf16.mxu0 %v1607_v52  ;;  %1499 = vmatprep.mubr.bf16.mxu1 %v1609_v53 }
  0x64   : > { %790 = vmatmul.mubr.bf16.gmra.mxu0 %v1610_v54  ;;  %1500 = vmatmul.mubr.bf16.gmra.mxu1 %v1611_v55 }
  0x65   : > { %797 = vmatprep.mubr.bf16.mxu0 %v1612_v56  ;;  %1503 = vmatprep.mubr.bf16.mxu1 %v1614_v57 }
  0x6c   : > { %798 = vmatmul.mubr.bf16.gmra.mxu0 %v1615_v58  ;;  %1504 = vmatmul.mubr.bf16.gmra.mxu1 %v1616_v59 }
  0x6d   : > { %805 = vmatprep.mubr.bf16.mxu0 %v1617_v60  ;;  %1507 = vmatprep.mubr.bf16.mxu1 %v1619_v61 }
  0x74   : > { %806 = vmatmul.mubr.bf16.gmra.mxu0 %v1620_v62  ;;  %1508 = vmatmul.mubr.bf16.gmra.mxu1 %v1621_v63 }
  0x75   : > { %813 = vmatprep.mubr.bf16.mxu0 %v1622_v0  ;;  %1511 = vmatprep.mubr.bf16.mxu1 %v1624_v1 }
  0x7c   : > { %814 = vmatmul.mubr.bf16.gmra.mxu0 %v1625_v2  ;;  %1512 = vmatmul.mubr.bf16.gmra.mxu1 %v1626_v3 }
  0x7d   : > { %821 = vmatprep.mubr.bf16.mxu0 %v1627_v4  ;;  %1515 = vmatprep.mubr.bf16.mxu1 %v1629_v5 }
  0x84   : > { %822 = vmatmul.mubr.bf16.gmra.mxu0 %v1630_v6  ;;  %1516 = vmatmul.mubr.bf16.gmra.mxu1 %v1631_v7 }
  0xec   : > { %v1351_v8 = vpop.f32.mrf.mxu0  ;;  %v1423_v9 = vpop.f32.mrf.mxu1 }
  0xee   : > { %v1352_v10 = vpop.f32.mrf.mxu0  ;;  %v1424_v11 = vpop.f32.mrf.mxu1 }
  0xef   : > { %v1799_v12 = vadd.f32 %v1424_v11, %v1423_v9  ;;  %v1353_v49 = vadd.f32 %v1352_v10, %v1351_v8 }
  0xf0   : > { %v1354_v13 = vpop.f32.mrf.mxu0  ;;  %v1426_v14 = vpop.f32.mrf.mxu1 }
  0xf2   : > { %v1355_v15 = vpop.f32.mrf.mxu0  ;;  %v1427_v16 = vpop.f32.mrf.mxu1 }
  0xf3   : > { %v1801_v17 = vadd.f32 %v1427_v16, %v1426_v14  ;;  %v1356_v57 = vadd.f32 %v1355_v15, %v1354_v13 }
  0xf4   : > { %v1357_v18 = vpop.f32.mrf.mxu0  ;;  %v1429_v19 = vpop.f32.mrf.mxu1 }
  0xf6   : > { %v1358_v20 = vpop.f32.mrf.mxu0  ;;  %v1430_v21 = vpop.f32.mrf.mxu1 }
  0xf7   : > { %v1803_v22 = vadd.f32 %v1430_v21, %v1429_v19  ;;  %v1359_v46 = vadd.f32 %v1358_v20, %v1357_v18 }
  0xf8   : > { %v1360_v23 = vpop.f32.mrf.mxu0  ;;  %v1432_v24 = vpop.f32.mrf.mxu1 }
  0xfa   : > { %v1361_v25 = vpop.f32.mrf.mxu0  ;;  %v1433_v26 = vpop.f32.mrf.mxu1 }
  0xfb   : > { %v1805_v27 = vadd.f32 %v1433_v26, %v1432_v24  ;;  %v1362_v53 = vadd.f32 %v1361_v25, %v1360_v23 }
  0xfc   : > { %v1363_v28 = vpop.f32.mrf.mxu0  ;;  %v1435_v29 = vpop.f32.mrf.mxu1 }
  0xfe   : > { %v1364_v30 = vpop.f32.mrf.mxu0  ;;  %v1436_v31 = vpop.f32.mrf.mxu1 }
  0xff   : > { %v1807_v32 = vadd.f32 %v1436_v31, %v1435_v29  ;;  %v1365_v5 = vadd.f32 %v1364_v30, %v1363_v28 }
 0x100   : > { %v1366_v33 = vpop.f32.mrf.mxu0  ;;  %v1438_v34 = vpop.f32.mrf.mxu1 }
 0x102   : > { %v1367_v35 = vpop.f32.mrf.mxu0  ;;  %v1439_v36 = vpop.f32.mrf.mxu1 }
 0x103   : > { %v1809_v37 = vadd.f32 %v1439_v36, %v1438_v34  ;;  %v1368_v21 = vadd.f32 %v1367_v35, %v1366_v33 }
 0x104   : > { %v1369_v38 = vpop.f32.mrf.mxu0  ;;  %v1811_v39 = vpop.f32.mrf.mxu1 }
 0x106   : > { %v1370_v40 = vpop.f32.mrf.mxu0  ;;  %v1813_v41 = vpop.f32.mrf.mxu1 }
 0x107   : > { %v1371_v61 = vadd.f32 %v1370_v40, %v1369_v38 }
 0x108   : > { %v1372_v42 = vpop.f32.mrf.mxu0  ;;  %v1815_v43 = vpop.f32.mrf.mxu1 }
 0x10a   : > { %v1373_v44 = vpop.f32.mrf.mxu0  ;;  %v1818_v45 = vpop.f32.mrf.mxu1 }
 0x10b   : > { %v1374_v8 = vadd.f32 %v1373_v44, %v1372_v42 }
 0x10c   : > { %v1375_v47 = vpop.f32.mrf.mxu0  ;;  %v1489_v48 = vpop.f32.mrf.mxu1 }
 0x10d   : > { %v905_v50 = vadd.f32 %v1489_v48, %v1359_v46 }
 0x10e   : > { %v1376_v51 = vpop.f32.mrf.mxu0  ;;  %v896_v52 = vpop.f32.mrf.mxu1 }
 0x10f   : > { %1025 = vst [vmem:[%s1823_s22 + $0x10] sm:$0xff] %v905_v50  ;;  %v897_v54 = vadd.f32 %v1353_v49, %v896_v52  ;;  %v1094_v9 = vmul.f32 %v905_v50, %v905_v50  ;;  %v1377_v36 = vadd.f32 %v1376_v51, %v1375_v47 }
 0x110   : > { %v1378_v55 = vpop.f32.mrf.mxu0  ;;  %v1490_v56 = vpop.f32.mrf.mxu1 }
 0x111   : > { %1023 = vst [vmem:[%s1823_s22] sm:$0xff] %v897_v54  ;;  %v908_v58 = vadd.f32 %v1490_v56, %v1362_v53  ;;  %v1092_v1 = vmul.f32 %v897_v54, %v897_v54 }
 0x112   : > { %v1379_v59 = vpop.f32.mrf.mxu0  ;;  %v899_v60 = vpop.f32.mrf.mxu1 }
 0x113   : > { %1026 = vst [vmem:[%s1823_s22 + $0x18] sm:$0xff] %v908_v58  ;;  %v900_v62 = vadd.f32 %v1356_v57, %v899_v60  ;;  %v1095_v16 = vmul.f32 %v908_v58, %v908_v58  ;;  %v1380_v56 = vadd.f32 %v1379_v59, %v1378_v55 }
 0x114   : > { %v1381_v63 = vpop.f32.mrf.mxu0  ;;  %v1493_v0 = vpop.f32.mrf.mxu1 }
 0x115   : > { %1024 = vst [vmem:[%s1823_s22 + $0x8] sm:$0xff] %v900_v62  ;;  %v1055_v2 = vadd.f32 %v900_v62, %v897_v54  ;;  %v1093_v3 = vmul.f32 %v900_v62, %v900_v62  ;;  %v921_v4 = vadd.f32 %v1493_v0, %v1371_v61 }
 0x116   : > { %v1382_v6 = vpop.f32.mrf.mxu0  ;;  %v912_v7 = vpop.f32.mrf.mxu1 }
 0x117   : > { %v1056_v10 = vadd.f32 %v1055_v2, %v905_v50  ;;  %v1124_v11 = vadd.f32 %v1093_v3, %v1092_v1  ;;  %1029 = vst [vmem:[%s1823_s22 + $0x30] sm:$0xff] %v921_v4  ;;  %v913_v13 = vadd.f32 %v1365_v5, %v912_v7  ;;  %v1383_v25 = vadd.f32 %v1382_v6, %v1381_v63 }
 0x118   : > { %v1384_v14 = vpop.f32.mrf.mxu0  ;;  %v1494_v15 = vpop.f32.mrf.mxu1  ;;  %v1098_v49 = vmul.f32 %v921_v4, %v921_v4 }
 0x119   : > { %v1125_v18 = vadd.f32 %v1124_v11, %v1094_v9  ;;  %v1057_v19 = vadd.f32 %v1056_v10, %v908_v58  ;;  %v924_v20 = vadd.f32 %v1494_v15, %v1374_v8  ;;  %1027 = vst [vmem:[%s1823_s22 + $0x20] sm:$0xff] %v913_v13  ;;  %v1096_v28 = vmul.f32 %v913_v13, %v913_v13 }
 0x11a   : > { %v1385_v23 = vpop.f32.mrf.mxu0  ;;  %v915_v24 = vpop.f32.mrf.mxu1 }
 0x11b   : > { %v1058_v26 = vadd.f32 %v1057_v19, %v913_v13  ;;  %v1126_v29 = vadd.f32 %v1125_v18, %v1095_v16  ;;  %1030 = vst [vmem:[%s1823_s22 + $0x38] sm:$0xff] %v924_v20  ;;  %v916_v30 = vadd.f32 %v1368_v21, %v915_v24  ;;  %v1386_v46 = vadd.f32 %v1385_v23, %v1384_v14 }
 0x11c   : > { %v1387_v31 = vpop.f32.mrf.mxu0  ;;  %v1497_v34 = vpop.f32.mrf.mxu1  ;;  %v1099_v51 = vmul.f32 %v924_v20, %v924_v20 }
 0x11d   : > { %v1127_v38 = vadd.f32 %v1126_v29, %v1096_v28  ;;  %v937_v40 = vadd.f32 %v1497_v34, %v1383_v25  ;;  %1028 = vst [vmem:[%s1823_s22 + $0x28] sm:$0xff] %v916_v30  ;;  %v1059_v42 = vadd.f32 %v1058_v26, %v916_v30  ;;  %v1097_v44 = vmul.f32 %v916_v30, %v916_v30 }
 0x11e   : > { %v1388_v33 = vpop.f32.mrf.mxu0  ;;  %v928_v35 = vpop.f32.mrf.mxu1 }
 0x11f   : > { %1033 = vst [vmem:[%s1823_s22 + $0x50] sm:$0xff] %v937_v40  ;;  %v929_v48 = vadd.f32 %v1377_v36, %v928_v35  ;;  %v1060_v50 = vadd.f32 %v1059_v42, %v921_v4  ;;  %v1128_v52 = vadd.f32 %v1127_v38, %v1097_v44  ;;  %v1389_v4 = vadd.f32 %v1388_v33, %v1387_v31 }
 0x120   : > { %v1390_v53 = vpop.f32.mrf.mxu0  ;;  %v1498_v54 = vpop.f32.mrf.mxu1  ;;  %v1102_v10 = vmul.f32 %v937_v40, %v937_v40 }
 0x121   : > { %1031 = vst [vmem:[%s1823_s22 + $0x40] sm:$0xff] %v929_v48  ;;  %v940_v47 = vadd.f32 %v1498_v54, %v1386_v46  ;;  %v1129_v57 = vadd.f32 %v1128_v52, %v1098_v49  ;;  %v1061_v58 = vadd.f32 %v1060_v50, %v924_v20  ;;  %v1100_v0 = vmul.f32 %v929_v48, %v929_v48 }
 0x122   : > { %v1391_v60 = vpop.f32.mrf.mxu0  ;;  %v931_v61 = vpop.f32.mrf.mxu1 }
 0x123   : > { %1034 = vst [vmem:[%s1823_s22 + $0x58] sm:$0xff] %v940_v47  ;;  %v932_v62 = vadd.f32 %v1380_v56, %v931_v61  ;;  %v1062_v63 = vadd.f32 %v1061_v58, %v929_v48  ;;  %v1130_v1 = vadd.f32 %v1129_v57, %v1099_v51  ;;  %v1392_v15 = vadd.f32 %v1391_v60, %v1390_v53 }
 0x124   : > { %v1393_v2 = vpop.f32.mrf.mxu0  ;;  %v1501_v3 = vpop.f32.mrf.mxu1  ;;  %v1103_v25 = vmul.f32 %v940_v47, %v940_v47 }
 0x125   : > { %1032 = vst [vmem:[%s1823_s22 + $0x48] sm:$0xff] %v932_v62  ;;  %v1101_v5 = vmul.f32 %v932_v62, %v932_v62  ;;  %v1131_v55 = vadd.f32 %v1130_v1, %v1100_v0  ;;  %v1063_v59 = vadd.f32 %v1062_v63, %v932_v62 }
 0x126   : > { %v1394_v6 = vpop.f32.mrf.mxu0  ;;  %v944_v7 = vpop.f32.mrf.mxu1 }
 0x127   : > { %v1395_v8 = vadd.f32 %v1394_v6, %v1393_v2  ;;  %v945_v9 = vadd.f32 %v1389_v4, %v944_v7  ;;  %v1132_v11 = vadd.f32 %v1131_v55, %v1101_v5  ;;  %v1064_v16 = vadd.f32 %v1063_v59, %v937_v40 }
 0x128   : > { %v1396_v13 = vpop.f32.mrf.mxu0  ;;  %v1502_v14 = vpop.f32.mrf.mxu1 }
 0x129   : > { %v953_v18 = vadd.f32 %v1501_v3, %v1395_v8  ;;  %1035 = vst [vmem:[%s1823_s22 + $0x60] sm:$0xff] %v945_v9  ;;  %v1133_v19 = vadd.f32 %v1132_v11, %v1102_v10  ;;  %v1065_v29 = vadd.f32 %v1064_v16, %v940_v47  ;;  %v1104_v40 = vmul.f32 %v945_v9, %v945_v9 }
 0x12a   : > { %v1397_v20 = vpop.f32.mrf.mxu0  ;;  %v947_v21 = vpop.f32.mrf.mxu1 }
 0x12b   : > { %1037 = vst [vmem:[%s1823_s22 + $0x70] sm:$0xff] %v953_v18  ;;  %v1398_v23 = vadd.f32 %v1397_v20, %v1396_v13  ;;  %v948_v24 = vadd.f32 %v1392_v15, %v947_v21  ;;  %v1134_v31 = vadd.f32 %v1133_v19, %v1103_v25  ;;  %v1066_v33 = vadd.f32 %v1065_v29, %v945_v9 }
 0x12c   : > { %v1399_v26 = vpop.f32.mrf.mxu0  ;;  %v1505_v28 = vpop.f32.mrf.mxu1  ;;  %v1106_v61 = vmul.f32 %v953_v18, %v953_v18  ;;  %v1443_v29 = vadd.f32 %v1813_v41, %v1811_v39  ;;  %v1446_v41 = vadd.f32 %v1818_v45, %v1815_v43 }
 0x12d   : > { %v956_v30 = vadd.f32 %v1502_v14, %v1398_v23  ;;  %1036 = vst [vmem:[%s1823_s22 + $0x68] sm:$0xff] %v948_v24  ;;  %v1135_v46 = vadd.f32 %v1134_v31, %v1104_v40  ;;  %v1105_v48 = vmul.f32 %v948_v24, %v948_v24  ;;  %v1067_v56 = vadd.f32 %v1066_v33, %v948_v24 }
 0x12e   : > { %v1400_v34 = vpop.f32.mrf.mxu0  ;;  %v960_v36 = vpop.f32.mrf.mxu1 }
 0x12f   : > { %1038 = vst [vmem:[%s1823_s22 + $0x78] sm:$0xff] %v956_v30  ;;  %v1401_v38 = vadd.f32 %v1400_v34, %v1399_v26  ;;  %v1136_v51 = vadd.f32 %v1135_v46, %v1105_v48  ;;  %v1068_v0 = vadd.f32 %v1067_v56, %v953_v18  ;;  %v1107_v55 = vmul.f32 %v956_v30, %v956_v30 }
 0x130   : > { %v1402_v42 = vpop.f32.mrf.mxu0  ;;  %v1506_v44 = vpop.f32.mrf.mxu1 }
 0x131   : > { %v961_v35 = vadd.f32 %v1401_v38, %v960_v36  ;;  %v1137_v2 = vadd.f32 %v1136_v51, %v1106_v61  ;;  %v1069_v7 = vadd.f32 %v1068_v0, %v956_v30 }
 0x132   : > { %v1403_v49 = vpop.f32.mrf.mxu0  ;;  %v963_v50 = vpop.f32.mrf.mxu1 }
 0x133   : > { %1039 = vst [vmem:[%s1823_s22 + $0x80] sm:$0xff] %v961_v35  ;;  %v1404_v52 = vadd.f32 %v1403_v49, %v1402_v42  ;;  %v1108_v10 = vmul.f32 %v961_v35, %v961_v35  ;;  %v1138_v11 = vadd.f32 %v1137_v2, %v1107_v55  ;;  %v1070_v21 = vadd.f32 %v1069_v7, %v961_v35 }
 0x134   : > { %v1405_v53 = vpop.f32.mrf.mxu0  ;;  %v1842_v54 = vpop.f32.mrf.mxu1 }
 0x135   : > { %v964_v47 = vadd.f32 %v1404_v52, %v963_v50  ;;  %v1139_v24 = vadd.f32 %v1138_v11, %v1108_v10 }
 0x136   : > { %v1406_v57 = vpop.f32.mrf.mxu0  ;;  %v976_v58 = vpop.f32.mrf.mxu1 }
 0x137   : > { %1040 = vst [vmem:[%s1823_s22 + $0x88] sm:$0xff] %v964_v47  ;;  %v1407_v60 = vadd.f32 %v1406_v57, %v1405_v53  ;;  %v1109_v16 = vmul.f32 %v964_v47, %v964_v47  ;;  %v1071_v30 = vadd.f32 %v1070_v21, %v964_v47 }
 0x138   : > { %v1408_v62 = vpop.f32.mrf.mxu0  ;;  %v1845_v63 = vpop.f32.mrf.mxu1 }
 0x139   : > { %v969_v1 = vadd.f32 %v1505_v28, %v1407_v60  ;;  %v1140_v31 = vadd.f32 %v1139_v24, %v1109_v16 }
 0x13a   : > { %v1409_v3 = vpop.f32.mrf.mxu0  ;;  %v979_v4 = vpop.f32.mrf.mxu1 }
 0x13b   : > { %1041 = vst [vmem:[%s1823_s22 + $0x90] sm:$0xff] %v969_v1  ;;  %v1410_v5 = vadd.f32 %v1409_v3, %v1408_v62  ;;  %v1110_v25 = vmul.f32 %v969_v1, %v969_v1  ;;  %v1072_v40 = vadd.f32 %v1071_v30, %v969_v1 }
 0x13c   : > { %v1411_v59 = vpop.f32.mrf.mxu0  ;;  %v1513_v6 = vpop.f32.mrf.mxu1 }
 0x13d   : > { %v972_v8 = vadd.f32 %v1506_v44, %v1410_v5  ;;  %v1849_v9 = vadd.f32 %v1513_v6, %v1803_v22  ;;  %v1141_v33 = vadd.f32 %v1140_v31, %v1110_v25 }
 0x13e   : > { %v1412_v13 = vpop.f32.mrf.mxu0  ;;  %v992_v14 = vpop.f32.mrf.mxu1 }
 0x13f   : > { %1042 = vst [vmem:[%s1823_s22 + $0x98] sm:$0xff] %v972_v8  ;;  %1049 = vst [vmem:[%s1823_s22 + $0xd0] sm:$0xff] %v1849_v9  ;;  %v1413_v15 = vadd.f32 %v1412_v13, %v1411_v59  ;;  %v993_v18 = vadd.f32 %v1799_v12, %v992_v14  ;;  %v1111_v34 = vmul.f32 %v972_v8, %v972_v8 }
 0x140   : > { %v1414_v19 = vpop.f32.mrf.mxu0  ;;  %v1514_v20 = vpop.f32.mrf.mxu1  ;;  %v1073_v46 = vadd.f32 %v1072_v40, %v972_v8  ;;  %v1118_v10 = vmul.f32 %v1849_v9, %v1849_v9 }
 0x141   : > { %v977_v23 = vadd.f32 %v1413_v15, %v976_v58  ;;  %v1856_v22 = vadd.f32 %v1514_v20, %v1805_v27  ;;  %1047 = vst [vmem:[%s1823_s22 + $0xc0] sm:$0xff] %v993_v18  ;;  %v1116_v5 = vmul.f32 %v993_v18, %v993_v18 }
 0x142   : > { %v1415_v26 = vpop.f32.mrf.mxu0  ;;  %v995_v28 = vpop.f32.mrf.mxu1 }
 0x143   : > { %1043 = vst [vmem:[%s1823_s22 + $0xa0] sm:$0xff] %v977_v23  ;;  %1050 = vst [vmem:[%s1823_s22 + $0xd8] sm:$0xff] %v1856_v22  ;;  %v1416_v12 = vadd.f32 %v1415_v26, %v1414_v19  ;;  %v996_v27 = vadd.f32 %v1801_v17, %v995_v28  ;;  %v1112_v48 = vmul.f32 %v977_v23, %v977_v23 }
 0x144   : > { %v1417_v36 = vpop.f32.mrf.mxu0  ;;  %v1517_v38 = vpop.f32.mrf.mxu1  ;;  %v1142_v17 = vadd.f32 %v1141_v33, %v1111_v34  ;;  %v1074_v56 = vadd.f32 %v1073_v46, %v977_v23 }
 0x145   : > { %v980_v42 = vadd.f32 %v1416_v12, %v979_v4  ;;  %v1017_v44 = vadd.f32 %v1517_v38, %v1443_v29  ;;  %1048 = vst [vmem:[%s1823_s22 + $0xc8] sm:$0xff] %v996_v27  ;;  %v1117_v6 = vmul.f32 %v996_v27, %v996_v27 }
 0x146   : > { %v1418_v35 = vpop.f32.mrf.mxu0  ;;  %v1008_v39 = vpop.f32.mrf.mxu1  ;;  %v1143_v58 = vadd.f32 %v1142_v17, %v1112_v48 }
 0x147   : > { %1044 = vst [vmem:[%s1823_s22 + $0xa8] sm:$0xff] %v980_v42  ;;  %1053 = vst [vmem:[%s1823_s22 + $0xf0] sm:$0xff] %v1017_v44  ;;  %v1419_v49 = vadd.f32 %v1418_v35, %v1417_v36  ;;  %v1009_v50 = vadd.f32 %v1807_v32, %v1008_v39  ;;  %v1113_v47 = vmul.f32 %v980_v42, %v980_v42 }
 0x148   : > { %v1420_v52 = vpop.f32.mrf.mxu0  ;;  %v1518_v53 = vpop.f32.mrf.mxu1  ;;  %v1075_v60 = vadd.f32 %v1074_v56, %v980_v42  ;;  %v1122_v23 = vmul.f32 %v1017_v44, %v1017_v44 }
 0x149   : > { %v985_v51 = vadd.f32 %v1842_v54, %v1419_v49  ;;  %v1020_v57 = vadd.f32 %v1518_v53, %v1446_v41  ;;  %1051 = vst [vmem:[%s1823_s22 + $0xe0] sm:$0xff] %v1009_v50  ;;  %v1144_v0 = vadd.f32 %v1143_v58, %v1113_v47  ;;  %v1120_v15 = vmul.f32 %v1009_v50, %v1009_v50 }
 0x14a   : > { %v1421_v43 = vpop.f32.mrf.mxu0  ;;  %v1011_v45 = vpop.f32.mrf.mxu1 }
 0x14b   : > { %1045 = vst [vmem:[%s1823_s22 + $0xb0] sm:$0xff] %v985_v51  ;;  %v1114_v61 = vmul.f32 %v985_v51, %v985_v51  ;;  %1054 = vst [vmem:[%s1823_s22 + $0xf8] sm:$0xff] %v1020_v57  ;;  %v1422_v62 = vadd.f32 %v1421_v43, %v1420_v52  ;;  %v1012_v32 = vadd.f32 %v1809_v37, %v1011_v45 }
 0x14c   : > { %v1076_v1 = vadd.f32 %v1075_v60, %v985_v51  ;;  %v1123_v26 = vmul.f32 %v1020_v57, %v1020_v57 }
 0x14d   : > { %v988_v2 = vadd.f32 %v1845_v63, %v1422_v62  ;;  %1052 = vst [vmem:[%s1823_s22 + $0xe8] sm:$0xff] %v1012_v32  ;;  %v1145_v3 = vadd.f32 %v1144_v0, %v1114_v61  ;;  %v1119_v63 = vmul.f32 %v1856_v22, %v1856_v22  ;;  %v1121_v20 = vmul.f32 %v1012_v32, %v1012_v32 }
 0x14f   : > { %1046 = vst [vmem:[%s1823_s22 + $0xb8] sm:$0xff] %v988_v2  ;;  %v1077_v54 = vadd.f32 %v1076_v1, %v988_v2  ;;  %v1115_v4 = vmul.f32 %v988_v2, %v988_v2 }
 0x151   : > { %v1078_v55 = vadd.f32 %v1077_v54, %v993_v18  ;;  %v1146_v59 = vadd.f32 %v1145_v3, %v1115_v4 }
 0x153   : > { %v1079_v7 = vadd.f32 %v1078_v55, %v996_v27  ;;  %v1147_v8 = vadd.f32 %v1146_v59, %v1116_v5 }
 0x155   : > { %v1148_v11 = vadd.f32 %v1147_v8, %v1117_v6  ;;  %v1080_v37 = vadd.f32 %v1079_v7, %v1849_v9 }
 0x157   : > { %v1081_v13 = vadd.f32 %v1080_v37, %v1856_v22  ;;  %v1149_v14 = vadd.f32 %v1148_v11, %v1118_v10 }
 0x159   : > { %v1082_v16 = vadd.f32 %v1081_v13, %v1009_v50  ;;  %v1150_v18 = vadd.f32 %v1149_v14, %v1119_v63 }
 0x15b   : > { %v1083_v19 = vadd.f32 %v1082_v16, %v1012_v32  ;;  %v1151_v21 = vadd.f32 %v1150_v18, %v1120_v15 }
 0x15d   : > { %v1084_v24 = vadd.f32 %v1083_v19, %v1017_v44  ;;  %v1152_v25 = vadd.f32 %v1151_v21, %v1121_v20 }
 0x15f   : > { %v1085_v28 = vadd.f32 %v1084_v24, %v1020_v57  ;;  %v1153_v9 = vadd.f32 %v1152_v25, %v1122_v23 }
 0x161   : > { %v1086_v29 = vrot.slane %v1085_v28, 4  ;;  %v1154_v30 = vadd.f32 %v1153_v9, %v1123_v26 }
 0x163   : > { %v1087_v12 = vadd.f32 %v1086_v29, %v1085_v28  ;;  %v1155_v22 = vrot.slane %v1154_v30, 4 }
 0x165   : > { %v1088_v31 = vrot.slane %v1087_v12, 2  ;;  %v1156_v34 = vadd.f32 %v1155_v22, %v1154_v30 }
 0x167   : > { %v1089_v27 = vadd.f32 %v1088_v31, %v1087_v12  ;;  %v1157_v36 = vrot.slane %v1156_v34, 2 }
 0x169   : > { %v1090_v38 = vrot.slane %v1089_v27, 1  ;;  %v1158_v40 = vadd.f32 %v1157_v36, %v1156_v34 }
 0x16b   : > { %v1159_v42 = vrot.slane %v1158_v40, 1  ;;  %v1091_v44 = vadd.f32 %v1090_v38, %v1089_v27 }
 0x16d   : > { %v1160_v33 = vadd.f32 %v1159_v42, %v1158_v40 }
 0x16f   : > { %v1162_v35 = vsel %vm1161_vm0, %v1091_v44, %v1160_v33 }
 0x170   : > { %1163 = vst [vmem:[%s187_s25] sm:$0x3] %v1162_v35 }
 0x171 PF: > { %s14_s12 = sadd.s32 1, %s1638_s12  }
 0x172   : > { %p11_p5 = scmp.ge.s32.totalorder %s14_s12, 4  }
 0x174   :  { %13 = sbr.rel (!%p11_p5) target bundleno = 1 (0x1), region = 70 }

// kernel: residual_block_forward.13
= control target key start
LH: loop header
LB: loop body
LE: loop exit
PB: predicated region body
PF: predicated region fallthrough
CT: control target
= control target key end

     0   :  { %11 = vsyncpa [#allocation3], 0  ;;  %s1201_s0 = inlined_call_operand.vmem [shape: f32[512,128], index: 0, kind: input, shape index: {}]   ;;  %s1202_s1 = inlined_call_operand.vmem [shape: f32[512,128], index: 1, kind: input, shape index: {}]   ;;  %s1203_s2 = inlined_call_operand.vmem [shape: f32[1,128], index: 2, kind: input, shape index: {}]   ;;  %s1204_s3 = inlined_call_operand.vmem [shape: f32[1,128], index: 3, kind: input, shape index: {}]   ;;  %s1205_s4 = inlined_call_operand.vmem [shape: f32[1,128], index: 4, kind: input, shape index: {}]   ;;  %s1206_s5 = inlined_call_operand.vmem [shape: f32[1,128], index: 5, kind: input, shape index: {}]   ;;  %s1207_s6 = inlined_call_operand.hbm [shape: f32[512,128], index: 6, kind: output, shape index: {}]  }
   0x1   :  { %13 = vsyncpa [#allocation3 + $0x1], 0  ;;  %s839_s21 = smov 0   ;;  %s841_s22 = smov 0  }
   0x2   :  { %s843_s23 = smov 0   ;;  %s845_s24 = smov 0  }
   0x3 LB: > { %s860_s25 = sadd.s32 4294967295, %s799_s24   ;;  %s679_s26 = sadd.s32 4294967294, %s799_s24   ;;  %s799_s24 = sphi %s845_s24, %s1213_s24   ;;  %s795_s23 = sphi %s843_s23, %s1212_s23   ;;  %s791_s22 = sphi %s841_s22, %s1211_s22   ;;  %s787_s21 = sphi %s839_s21, %s1210_s21  }
   0x4   : > { %s864_s27 = sadd.s32 1, %s799_s24   ;;  %s162_s28 = sadd.s32 1, %s795_s23 }
   0x5   : > { %s159_s29 = ssub.s32 %s799_s24, %s864_s27  ;;  %p172_p0 = scmp.ne.s32.totalorder %s795_s23, %s791_s22 }
   0x6   : > { %p160_p1 = scmp.eq.s32.totalorder %s159_s29, 0  ;;  %p173_p2 = scmp.eq.s32.totalorder %s860_s25, 1 }
   0x7   : > { %p178_p3 = scmp.ne.s32.totalorder %s791_s22, %s787_s21  ;;  %p179_p4 = scmp.eq.s32.totalorder %s679_s26, 1 }
   0x8   : > { %s875_s30 = scalar_select %p160_p1, %s795_s23, %s162_s28  }
   0x9   : > { %p877_p5 = por %p173_p2, %p172_p0  ;;  %p881_p6 = por %p179_p4, %p178_p3 }
   0xa   : > { %p682_p7 = scmp.ge.s32.totalorder %s799_s24, 1  ;;  %p227_p8 = scmp.lt.s32.totalorder %s799_s24, 3 }
   0xc   : > { %p228_p9 = pnand %p682_p7, %p227_p8 }
   0xd   : > { %s684_s9 = sshll.u32 (!%p228_p9), %s860_s25, 5  ;;  %s259_s11 = sand.u32 (!%p228_p9), 1, %s791_s22  }
   0xe   : > { %231 = sbr.rel (%p228_p9) target bundleno = 90 (0x5a), region = 44  ;;  %p263_p10 = scmp.lt.s32.totalorder (!%p228_p9), %s684_s9, 63 }
   0xf   : > { %s697_s13 = sshll.u32 (!%p228_p9), %s860_s25, 12  ;;  %s1161_s25 = scalar_lea.sflag (!%p228_p9), [#allocation3], %s259_s11 }
  0x10   : > { %s801_s19 = smov (!%p228_p9), [#allocation2]  }
  0x13   : > { %s1215_s9 = smov (!%p263_p10, %s684_s9), 63  ;;  %v891_v0 = vld [vmem:[%s1203_s2] ss:$0 sm:$0xff] }
  0x14   : > { %s685_s10 = sshll.u32 %s1215_s9, 3  ;;  %v896_v1 = vld [vmem:[%s1205_s4] ss:$0 sm:$0xff] }
  0x15   : > { %s901_s17 = scalar_lea.vmem %s1201_s0, %s685_s10  ;;  %s906_s20 = scalar_lea.vmem %s1202_s1, %s685_s10  ;;  %v911_v2 = vld [vmem:[%s1204_s3] ss:$0 sm:$0xff] }
  0x16   : > { %v916_v3 = vld [vmem:[%s1206_s5] ss:$0 sm:$0xff]  ;;  %v276_v6 = vld [vmem:[%s901_s17 + $0x8] sm:$0xff]  ;;  %v277_v11 = vld [vmem:[%s901_s17 + $0x10] sm:$0xff]  ;;  %s936_s10 = sshll.u32 %s259_s11, 8 }
  0x17   : > { %v275_v4 = vld [vmem:[%s901_s17] sm:$0xff]  ;;  %v315_v9 = vmul.f32 %v891_v0, %v276_v6  ;;  %v386_v10 = vld [vmem:[%s906_s20 + $0x8] sm:$0xff]  ;;  %v387_v12 = vld [vmem:[%s906_s20 + $0x10] sm:$0xff]  ;;  %v316_v14 = vmul.f32 %v891_v0, %v277_v11  ;;  %s964_s12 = scalar_lea.vmem [#allocation2], %s936_s10 }
  0x18   : > { %v385_v5 = vld [vmem:[%s906_s20] sm:$0xff]  ;;  %v314_v7 = vmul.f32 %v891_v0, %v275_v4  ;;  %v425_v13 = vmul.f32 %v896_v1, %v386_v10  ;;  %v426_v15 = vmul.f32 %v896_v1, %v387_v12  ;;  %v278_v16 = vld [vmem:[%s901_s17 + $0x18] sm:$0xff]  ;;  %v280_v24 = vld [vmem:[%s901_s17 + $0x28] sm:$0xff]  ;;  %s605_s14 = sshll.u32 %s964_s12, 4  ;;  %s1155_s14 = int_to_ptr.vmem [resolvable:$true] %s605_s14 }
  0x19   : > { %v424_v8 = vmul.f32 %v896_v1, %v385_v5  ;;  %v388_v17 = vld [vmem:[%s906_s20 + $0x18] sm:$0xff]  ;;  %v279_v18 = vld [vmem:[%s901_s17 + $0x20] sm:$0xff]  ;;  %v354_v21 = vadd.f32 %v911_v2, %v315_v9  ;;  %v317_v22 = vmul.f32 %v891_v0, %v278_v16  ;;  %v355_v26 = vadd.f32 %v911_v2, %v316_v14  ;;  %v390_v29 = vld [vmem:[%s906_s20 + $0x28] sm:$0xff]  ;;  %s739_s18 = scalar_lea.vmem %s1155_s14, 4096 }
  0x1a   : > { %v353_v19 = vadd.f32 %v911_v2, %v314_v7  ;;  %v389_v23 = vld [vmem:[%s906_s20 + $0x20] sm:$0xff]  ;;  %v464_v25 = vadd.f32 %v916_v3, %v425_v13  ;;  %v465_v27 = vadd.f32 %v916_v3, %v426_v15  ;;  %v427_v28 = vmul.f32 %v896_v1, %v388_v17  ;;  %v281_v38 = vld [vmem:[%s901_s17 + $0x30] sm:$0xff]  ;;  %v282_v44 = vld [vmem:[%s901_s17 + $0x38] sm:$0xff]  ;;  %p740_p11 = scmp.ne.s32.totalorder %s1155_s14, %s739_s18 }
  0x1b   : > { %v463_v20 = vadd.f32 %v916_v3, %v424_v8  ;;  %v356_v31 = vadd.f32 %v911_v2, %v317_v22  ;;  %v318_v32 = vmul.f32 %v891_v0, %v279_v18  ;;  %v428_v33 = vmul.f32 %v896_v1, %v389_v23  ;;  %v391_v39 = vld [vmem:[%s906_s20 + $0x30] sm:$0xff]  ;;  %v392_v45 = vld [vmem:[%s906_s20 + $0x38] sm:$0xff]  ;;  %v283_v46 = vld [vmem:[%s901_s17 + $0x40] sm:$0xff] }
  0x1c   : > { %v496_v34 = vadd.f32 %v464_v25, %v354_v21  ;;  %v497_v35 = vadd.f32 %v465_v27, %v355_v26  ;;  %v466_v36 = vadd.f32 %v916_v3, %v427_v28  ;;  %v319_v37 = vmul.f32 %v891_v0, %v280_v24  ;;  %v393_v55 = vld [vmem:[%s906_s20 + $0x40] sm:$0xff]  ;;  %v284_v60 = vld [vmem:[%s901_s17 + $0x48] sm:$0xff]  ;;  %v285_v6 = vld [vmem:[%s901_s17 + $0x50] sm:$0xff]  ;;  %p741_p12 = pnand %p740_p11, %p877_p5 }
  0x1d   : > { %v495_v30 = vadd.f32 %v463_v20, %v353_v19  ;;  %v357_v41 = vadd.f32 %v911_v2, %v318_v32  ;;  %v467_v42 = vadd.f32 %v916_v3, %v428_v33  ;;  %v429_v43 = vmul.f32 %v896_v1, %v390_v29  ;;  %v394_v61 = vld [vmem:[%s906_s20 + $0x48] sm:$0xff]  ;;  %v395_v7 = vld [vmem:[%s906_s20 + $0x50] sm:$0xff]  ;;  %v286_v12 = vld [vmem:[%s901_s17 + $0x58] sm:$0xff] }
  0x1e   : > { %v528_v47 = vmax.f32 %v496_v34, 0.0  ;;  %v529_v48 = vmax.f32 %v497_v35, 0.0  ;;  %v498_v49 = vadd.f32 %v466_v36, %v356_v31  ;;  %v358_v50 = vadd.f32 %v911_v2, %v319_v37  ;;  %v396_v21 = vld [vmem:[%s906_s20 + $0x58] sm:$0xff]  ;;  %v287_v22 = vld [vmem:[%s901_s17 + $0x60] sm:$0xff]  ;;  %v288_v28 = vld [vmem:[%s901_s17 + $0x68] sm:$0xff]  ;;  %p742_p13 = pneg %p741_p12 }
  0x1f   : > { %v527_v40 = vmax.f32 %v495_v30, 0.0  ;;  %v499_v51 = vadd.f32 %v467_v42, %v357_v41  ;;  %v468_v52 = vadd.f32 %v916_v3, %v429_v43  ;;  %v320_v53 = vmul.f32 %v891_v0, %v281_v38  ;;  %v397_v27 = vld [vmem:[%s906_s20 + $0x60] sm:$0xff]  ;;  %v398_v33 = vld [vmem:[%s906_s20 + $0x68] sm:$0xff]  ;;  %v289_v38 = vld [vmem:[%s901_s17 + $0x70] sm:$0xff] }
  0x20   : > { %v430_v54 = vmul.f32 %v896_v1, %v391_v39  ;;  %560 = vst [vmem:[%s964_s12 + $0x8] sm:$0xff] %v528_v47  ;;  %561 = vst [vmem:[%s964_s12 + $0x10] sm:$0xff] %v529_v48  ;;  %v530_v56 = vmax.f32 %v498_v49, 0.0  ;;  %v321_v57 = vmul.f32 %v891_v0, %v282_v44  ;;  %v431_v58 = vmul.f32 %v896_v1, %v392_v45  ;;  %v399_v43 = vld [vmem:[%s906_s20 + $0x70] sm:$0xff]  ;;  %v290_v44 = vld [vmem:[%s901_s17 + $0x78] sm:$0xff] }
  0x21   : > { %559 = vst [vmem:[%s964_s12] sm:$0xff] %v527_v40  ;;  %v322_v59 = vmul.f32 %v891_v0, %v283_v46  ;;  %v531_v62 = vmax.f32 %v499_v51, 0.0  ;;  %v500_v63 = vadd.f32 %v468_v52, %v358_v50  ;;  %v359_v4 = vadd.f32 %v911_v2, %v320_v53  ;;  %v400_v49 = vld [vmem:[%s906_s20 + $0x78] sm:$0xff]  ;;  %v291_v50 = vld [vmem:[%s901_s17 + $0x80] sm:$0xff] }
  0x22   : > { %v469_v5 = vadd.f32 %v916_v3, %v430_v54  ;;  %562 = vst [vmem:[%s964_s12 + $0x18] sm:$0xff] %v530_v56  ;;  %v360_v8 = vadd.f32 %v911_v2, %v321_v57  ;;  %v470_v9 = vadd.f32 %v916_v3, %v431_v58  ;;  %v432_v11 = vmul.f32 %v896_v1, %v393_v55 }
  0x23   : > { %v361_v10 = vadd.f32 %v911_v2, %v322_v59  ;;  %563 = vst [vmem:[%s964_s12 + $0x20] sm:$0xff] %v531_v62  ;;  %v532_v13 = vmax.f32 %v500_v63, 0.0  ;;  %v323_v15 = vmul.f32 %v891_v0, %v284_v60  ;;  %v433_v16 = vmul.f32 %v896_v1, %v394_v61  ;;  %v401_v59 = vld [vmem:[%s906_s20 + $0x80] sm:$0xff] }
  0x24   : > { %v501_v14 = vadd.f32 %v469_v5, %v359_v4  ;;  %v502_v17 = vadd.f32 %v470_v9, %v360_v8  ;;  %v471_v18 = vadd.f32 %v916_v3, %v432_v11  ;;  %v324_v19 = vmul.f32 %v891_v0, %v285_v6  ;;  %v292_v4 = vld [vmem:[%s901_s17 + $0x88] sm:$0xff]  ;;  %v403_v11 = vld [vmem:[%s906_s20 + $0x90] sm:$0xff] }
  0x25   : > { %v434_v20 = vmul.f32 %v896_v1, %v395_v7  ;;  %564 = vst [vmem:[%s964_s12 + $0x28] sm:$0xff] %v532_v13  ;;  %v362_v24 = vadd.f32 %v911_v2, %v323_v15  ;;  %v472_v25 = vadd.f32 %v916_v3, %v433_v16  ;;  %v325_v26 = vmul.f32 %v891_v0, %v286_v12  ;;  %v402_v5 = vld [vmem:[%s906_s20 + $0x88] sm:$0xff]  ;;  %v294_v16 = vld [vmem:[%s901_s17 + $0x98] sm:$0xff] }
  0x26   : > { %v533_v23 = vmax.f32 %v501_v14, 0.0  ;;  %v534_v29 = vmax.f32 %v502_v17, 0.0  ;;  %v503_v30 = vadd.f32 %v471_v18, %v361_v10  ;;  %v363_v31 = vadd.f32 %v911_v2, %v324_v19  ;;  %v293_v10 = vld [vmem:[%s901_s17 + $0x90] sm:$0xff] }
  0x27   : > { %v473_v32 = vadd.f32 %v916_v3, %v434_v20  ;;  %v504_v34 = vadd.f32 %v472_v25, %v362_v24  ;;  %v364_v35 = vadd.f32 %v911_v2, %v325_v26  ;;  %v435_v36 = vmul.f32 %v896_v1, %v396_v21  ;;  %v404_v25 = vld [vmem:[%s906_s20 + $0x98] sm:$0xff]  ;;  %v295_v26 = vld [vmem:[%s901_s17 + $0xa0] sm:$0xff] }
  0x28   : > { %565 = vst [vmem:[%s964_s12 + $0x30] sm:$0xff] %v533_v23  ;;  %v326_v37 = vmul.f32 %v891_v0, %v287_v22  ;;  %566 = vst [vmem:[%s964_s12 + $0x38] sm:$0xff] %v534_v29  ;;  %v535_v39 = vmax.f32 %v503_v30, 0.0  ;;  %v436_v41 = vmul.f32 %v896_v1, %v397_v27  ;;  %v327_v42 = vmul.f32 %v891_v0, %v288_v28 }
  0x29   : > { %v505_v40 = vadd.f32 %v473_v32, %v363_v31  ;;  %v536_v45 = vmax.f32 %v504_v34, 0.0  ;;  %v474_v46 = vadd.f32 %v916_v3, %v435_v36  ;;  %v437_v48 = vmul.f32 %v896_v1, %v398_v33  ;;  %v405_v31 = vld [vmem:[%s906_s20 + $0xa0] sm:$0xff]  ;;  %v296_v32 = vld [vmem:[%s901_s17 + $0xa8] sm:$0xff] }
  0x2a   : > { %v365_v47 = vadd.f32 %v911_v2, %v326_v37  ;;  %567 = vst [vmem:[%s964_s12 + $0x40] sm:$0xff] %v535_v39  ;;  %v475_v52 = vadd.f32 %v916_v3, %v436_v41  ;;  %v366_v53 = vadd.f32 %v911_v2, %v327_v42  ;;  %v328_v54 = vmul.f32 %v891_v0, %v289_v38  ;;  %v406_v37 = vld [vmem:[%s906_s20 + $0xa8] sm:$0xff]  ;;  %v297_v42 = vld [vmem:[%s901_s17 + $0xb0] sm:$0xff] }
  0x2b   : > { %v537_v51 = vmax.f32 %v505_v40, 0.0  ;;  %568 = vst [vmem:[%s964_s12 + $0x48] sm:$0xff] %v536_v45  ;;  %v506_v55 = vadd.f32 %v474_v46, %v364_v35  ;;  %v476_v56 = vadd.f32 %v916_v3, %v437_v48  ;;  %v438_v57 = vmul.f32 %v896_v1, %v399_v43  ;;  %v298_v48 = vld [vmem:[%s901_s17 + $0xb8] sm:$0xff] }
  0x2c   : > { %v329_v58 = vmul.f32 %v891_v0, %v290_v44  ;;  %v507_v60 = vadd.f32 %v475_v52, %v365_v47  ;;  %v367_v61 = vadd.f32 %v911_v2, %v328_v54  ;;  %v439_v62 = vmul.f32 %v896_v1, %v400_v49  ;;  %v407_v47 = vld [vmem:[%s906_s20 + $0xb0] sm:$0xff]  ;;  %v299_v54 = vld [vmem:[%s901_s17 + $0xc0] sm:$0xff] }
  0x2d   : > { %569 = vst [vmem:[%s964_s12 + $0x50] sm:$0xff] %v537_v51  ;;  %v330_v63 = vmul.f32 %v891_v0, %v291_v50  ;;  %v538_v6 = vmax.f32 %v506_v55, 0.0  ;;  %v508_v7 = vadd.f32 %v476_v56, %v366_v53  ;;  %v477_v8 = vadd.f32 %v916_v3, %v438_v57  ;;  %v408_v53 = vld [vmem:[%s906_s20 + $0xb8] sm:$0xff] }
  0x2e   : > { %v368_v9 = vadd.f32 %v911_v2, %v329_v58  ;;  %v539_v12 = vmax.f32 %v507_v60, 0.0  ;;  %v478_v13 = vadd.f32 %v916_v3, %v439_v62  ;;  %v440_v15 = vmul.f32 %v896_v1, %v401_v59 }
  0x2f   : > { %v369_v14 = vadd.f32 %v911_v2, %v330_v63  ;;  %570 = vst [vmem:[%s964_s12 + $0x58] sm:$0xff] %v538_v6  ;;  %v540_v17 = vmax.f32 %v508_v7, 0.0  ;;  %v509_v18 = vadd.f32 %v477_v8, %v367_v61  ;;  %v331_v19 = vmul.f32 %v891_v0, %v292_v4  ;;  %v409_v63 = vld [vmem:[%s906_s20 + $0xc0] sm:$0xff]  ;;  %v300_v8 = vld [vmem:[%s901_s17 + $0xc8] sm:$0xff] }
  0x30   : > { %v441_v20 = vmul.f32 %v896_v1, %v402_v5  ;;  %571 = vst [vmem:[%s964_s12 + $0x60] sm:$0xff] %v539_v12  ;;  %v510_v21 = vadd.f32 %v478_v13, %v368_v9  ;;  %v479_v22 = vadd.f32 %v916_v3, %v440_v15  ;;  %v332_v23 = vmul.f32 %v891_v0, %v293_v10  ;;  %v410_v9 = vld [vmem:[%s906_s20 + $0xc8] sm:$0xff]  ;;  %v411_v15 = vld [vmem:[%s906_s20 + $0xd0] sm:$0xff] }
  0x31   : > { %v442_v24 = vmul.f32 %v896_v1, %v403_v11  ;;  %572 = vst [vmem:[%s964_s12 + $0x68] sm:$0xff] %v540_v17  ;;  %v541_v27 = vmax.f32 %v509_v18, 0.0  ;;  %v370_v28 = vadd.f32 %v911_v2, %v331_v19  ;;  %v333_v30 = vmul.f32 %v891_v0, %v294_v16 }
  0x32   : > { %v480_v29 = vadd.f32 %v916_v3, %v441_v20  ;;  %v542_v33 = vmax.f32 %v510_v21, 0.0  ;;  %v511_v34 = vadd.f32 %v479_v22, %v369_v14  ;;  %v371_v35 = vadd.f32 %v911_v2, %v332_v23  ;;  %v301_v14 = vld [vmem:[%s901_s17 + $0xd0] sm:$0xff]  ;;  %v302_v20 = vld [vmem:[%s901_s17 + $0xd8] sm:$0xff] }
  0x33   : > { %v481_v36 = vadd.f32 %v916_v3, %v442_v24  ;;  %573 = vst [vmem:[%s964_s12 + $0x70] sm:$0xff] %v541_v27  ;;  %v372_v39 = vadd.f32 %v911_v2, %v333_v30  ;;  %v443_v40 = vmul.f32 %v896_v1, %v404_v25  ;;  %v334_v41 = vmul.f32 %v891_v0, %v295_v26  ;;  %v303_v30 = vld [vmem:[%s901_s17 + $0xe0] sm:$0xff] }
  0x34   : > { %v512_v38 = vadd.f32 %v480_v29, %v370_v28  ;;  %574 = vst [vmem:[%s964_s12 + $0x78] sm:$0xff] %v542_v33  ;;  %v543_v43 = vmax.f32 %v511_v34, 0.0  ;;  %v444_v45 = vmul.f32 %v896_v1, %v405_v31  ;;  %v335_v46 = vmul.f32 %v891_v0, %v296_v32  ;;  %v412_v29 = vld [vmem:[%s906_s20 + $0xd8] sm:$0xff] }
  0x35   : > { %v513_v44 = vadd.f32 %v481_v36, %v371_v35  ;;  %v482_v50 = vadd.f32 %v916_v3, %v443_v40  ;;  %v373_v51 = vadd.f32 %v911_v2, %v334_v41  ;;  %v445_v52 = vmul.f32 %v896_v1, %v406_v37  ;;  %v413_v35 = vld [vmem:[%s906_s20 + $0xe0] sm:$0xff]  ;;  %v304_v36 = vld [vmem:[%s901_s17 + $0xe8] sm:$0xff] }
  0x36   : > { %v544_v49 = vmax.f32 %v512_v38, 0.0  ;;  %575 = vst [vmem:[%s964_s12 + $0x80] sm:$0xff] %v543_v43  ;;  %v483_v56 = vadd.f32 %v916_v3, %v444_v45  ;;  %v374_v57 = vadd.f32 %v911_v2, %v335_v46  ;;  %v336_v58 = vmul.f32 %v891_v0, %v297_v42  ;;  %v414_v41 = vld [vmem:[%s906_s20 + $0xe8] sm:$0xff]  ;;  %v305_v46 = vld [vmem:[%s901_s17 + $0xf0] sm:$0xff] }
  0x37   : > { %v545_v55 = vmax.f32 %v513_v44, 0.0  ;;  %v514_v59 = vadd.f32 %v482_v50, %v372_v39  ;;  %v484_v60 = vadd.f32 %v916_v3, %v445_v52  ;;  %v446_v61 = vmul.f32 %v896_v1, %v407_v47  ;;  %v306_v52 = vld [vmem:[%s901_s17 + $0xf8] sm:$0xff]  ;;  %s1153_s17 = scalar_lea.hbm %s1207_s6, %s697_s13 }
  0x38   : > { %576 = vst [vmem:[%s964_s12 + $0x88] sm:$0xff] %v544_v49  ;;  %v337_v62 = vmul.f32 %v891_v0, %v298_v48  ;;  %v515_v4 = vadd.f32 %v483_v56, %v373_v51  ;;  %v375_v5 = vadd.f32 %v911_v2, %v336_v58  ;;  %v447_v6 = vmul.f32 %v896_v1, %v408_v53  ;;  %v415_v51 = vld [vmem:[%s906_s20 + $0xf0] sm:$0xff] }
  0x39   : > { %577 = vst [vmem:[%s964_s12 + $0x90] sm:$0xff] %v545_v55  ;;  %v338_v7 = vmul.f32 %v891_v0, %v299_v54  ;;  %v546_v10 = vmax.f32 %v514_v59, 0.0  ;;  %v516_v11 = vadd.f32 %v484_v60, %v374_v57  ;;  %v485_v12 = vadd.f32 %v916_v3, %v446_v61  ;;  %v416_v57 = vld [vmem:[%s906_s20 + $0xf8] sm:$0xff]  ;;  %s743_s20 = sshll.u32 %s801_s19, 4  ;;  %s744_s20 = int_to_ptr.vmem [resolvable:$false] %s743_s20 }
  0x3a   : > { %v376_v13 = vadd.f32 %v911_v2, %v337_v62  ;;  %v547_v16 = vmax.f32 %v515_v4, 0.0  ;;  %v486_v17 = vadd.f32 %v916_v3, %v447_v6  ;;  %v448_v19 = vmul.f32 %v896_v1, %v409_v63  ;;  %s745_s26 = scalar_lea.vmem %s744_s20, 8192  ;;  %p746_p0 = scmp.lt.s32.totalorder %s1155_s14, %s744_s20 }
  0x3b   : > { %v377_v18 = vadd.f32 %v911_v2, %v338_v7  ;;  %578 = vst [vmem:[%s964_s12 + $0x98] sm:$0xff] %v546_v10  ;;  %v548_v21 = vmax.f32 %v516_v11, 0.0  ;;  %v517_v22 = vadd.f32 %v485_v12, %v375_v5  ;;  %v339_v23 = vmul.f32 %v891_v0, %v300_v8  ;;  %p747_p1 = scmp.lt.s32.totalorder %s745_s26, %s739_s18 }
  0x3c   : > { %v449_v24 = vmul.f32 %v896_v1, %v410_v9  ;;  %579 = vst [vmem:[%s964_s12 + $0xa0] sm:$0xff] %v547_v16  ;;  %v518_v25 = vadd.f32 %v486_v17, %v376_v13  ;;  %v487_v26 = vadd.f32 %v916_v3, %v448_v19  ;;  %v340_v27 = vmul.f32 %v891_v0, %v301_v14 }
  0x3d   : > { %v450_v28 = vmul.f32 %v896_v1, %v411_v15  ;;  %580 = vst [vmem:[%s964_s12 + $0xa8] sm:$0xff] %v548_v21  ;;  %v549_v31 = vmax.f32 %v517_v22, 0.0  ;;  %v378_v32 = vadd.f32 %v911_v2, %v339_v23  ;;  %v341_v34 = vmul.f32 %v891_v0, %v302_v20  ;;  %p748_p2 = por %p747_p1, %p746_p0 }
  0x3e   : > { %v488_v33 = vadd.f32 %v916_v3, %v449_v24  ;;  %v550_v37 = vmax.f32 %v518_v25, 0.0  ;;  %v519_v38 = vadd.f32 %v487_v26, %v377_v18  ;;  %v379_v39 = vadd.f32 %v911_v2, %v340_v27 }
  0x3f   : > { %v489_v40 = vadd.f32 %v916_v3, %v450_v28  ;;  %581 = vst [vmem:[%s964_s12 + $0xb0] sm:$0xff] %v549_v31  ;;  %v380_v43 = vadd.f32 %v911_v2, %v341_v34  ;;  %v451_v44 = vmul.f32 %v896_v1, %v412_v29  ;;  %v342_v45 = vmul.f32 %v891_v0, %v303_v30  ;;  %p749_p3 = pnand %p748_p2, %p742_p13 }
  0x40   : > { %v520_v42 = vadd.f32 %v488_v33, %v378_v32  ;;  %582 = vst [vmem:[%s964_s12 + $0xb8] sm:$0xff] %v550_v37  ;;  %v551_v47 = vmax.f32 %v519_v38, 0.0  ;;  %v452_v49 = vmul.f32 %v896_v1, %v413_v35  ;;  %v343_v50 = vmul.f32 %v891_v0, %v304_v36 }
  0x41   : > { %v521_v48 = vadd.f32 %v489_v40, %v379_v39  ;;  %v490_v54 = vadd.f32 %v916_v3, %v451_v44  ;;  %v381_v55 = vadd.f32 %v911_v2, %v342_v45  ;;  %v453_v56 = vmul.f32 %v896_v1, %v414_v41 }
  0x42   : > { %v552_v53 = vmax.f32 %v520_v42, 0.0  ;;  %583 = vst [vmem:[%s964_s12 + $0xc0] sm:$0xff] %v551_v47  ;;  %v491_v59 = vadd.f32 %v916_v3, %v452_v49  ;;  %v382_v60 = vadd.f32 %v911_v2, %v343_v50  ;;  %v344_v61 = vmul.f32 %v891_v0, %v305_v46 }
  0x43   : > { %v553_v58 = vmax.f32 %v521_v48, 0.0  ;;  %v522_v62 = vadd.f32 %v490_v54, %v380_v43  ;;  %v492_v63 = vadd.f32 %v916_v3, %v453_v56  ;;  %v454_v4 = vmul.f32 %v896_v1, %v415_v51 }
  0x44   : > { %584 = vst [vmem:[%s964_s12 + $0xc8] sm:$0xff] %v552_v53  ;;  %v345_v5 = vmul.f32 %v891_v0, %v306_v52  ;;  %v523_v6 = vadd.f32 %v491_v59, %v381_v55  ;;  %v383_v7 = vadd.f32 %v911_v2, %v344_v61  ;;  %v455_v8 = vmul.f32 %v896_v1, %v416_v57 }
  0x45   : > { %585 = vst [vmem:[%s964_s12 + $0xd0] sm:$0xff] %v553_v58  ;;  %v554_v9 = vmax.f32 %v522_v62, 0.0  ;;  %v524_v10 = vadd.f32 %v492_v63, %v382_v60  ;;  %v493_v11 = vadd.f32 %v916_v3, %v454_v4 }
  0x46   : > { %v384_v12 = vadd.f32 %v911_v2, %v345_v5  ;;  %v555_v13 = vmax.f32 %v523_v6, 0.0  ;;  %v494_v0 = vadd.f32 %v916_v3, %v455_v8 }
  0x47   : > { %586 = vst [vmem:[%s964_s12 + $0xd8] sm:$0xff] %v554_v9  ;;  %v556_v14 = vmax.f32 %v524_v10, 0.0  ;;  %v525_v15 = vadd.f32 %v493_v11, %v383_v7 }
  0x48   : > { %587 = vst [vmem:[%s964_s12 + $0xe0] sm:$0xff] %v555_v13  ;;  %v526_v1 = vadd.f32 %v494_v0, %v384_v12 }
  0x49   : > { %588 = vst [vmem:[%s964_s12 + $0xe8] sm:$0xff] %v556_v14  ;;  %v557_v16 = vmax.f32 %v525_v15, 0.0 }
  0x4a   : > { %v558_v2 = vmax.f32 %v526_v1, 0.0 }
  0x4b   : > { %589 = vst [vmem:[%s964_s12 + $0xf0] sm:$0xff] %v557_v16 }
  0x4c   : > { %590 = vst [vmem:[%s964_s12 + $0xf8] sm:$0xff] %v558_v2 }
  0x4d   : > { %752 = shalt.err (!%p749_p3)
}
  0x4e   : > { %s753_s28 = scalar_lea.hbm %s1153_s17, 4096  ;;  %s757_s11 = scalar_lea.hbm %s1207_s6, 8192 }
  0x4f   : > { %p754_p4 = scmp.ne.s32.totalorder %s1153_s17, %s753_s28  ;;  %p758_p9 = scmp.lt.s32.totalorder %s1153_s17, %s1207_s6 }
  0x50   : > { %p759_p10 = scmp.lt.s32.totalorder %s757_s11, %s753_s28 }
  0x51   : > { %p755_p7 = pnand %p754_p4, %p877_p5 }
  0x52   : > { %p760_p11 = por %p759_p10, %p758_p9 }
  0x53   : > { %p756_p8 = pneg %p755_p7 }
  0x55   : > { %p761_p12 = pnand %p760_p11, %p756_p8 }
  0x57   : > { %764 = shalt.err (!%p761_p12)
}
  0x58   : > { %s802_s13 = smov 128   ;;  %s803_s15 = smov 8  }
  0x59   : > { %698 = dma.vmem_to_hbm [thread:$0]  (%p877_p5), %s1155_s14, 4096, %s1153_s17, %s1161_s25, %s802_s13, %s802_s13, %s803_s15  }
  0x5a PF: > { %p704_p13 = scmp.ge.s32.totalorder %s799_s24, 2  ;;  %s620_s16 = sand.u32 1, %s787_s21  }
  0x5b   : > { %s621_s18 = scalar_lea.sflag [#allocation3], %s620_s16 }
  0x5c   : > { %p701_p0 = pnand %p704_p13, %p881_p6 }
  0x5e   : > { %p702_p1 = pneg %p701_p0 }
  0x60   : > { %782 = dma.done.wait (%p702_p1), %s621_s18, 4096  }
  0x61   : > { %784 = vsyncadd (%p702_p1), %s621_s18, 4294963200  ;;  %p16_p2 = scmp.ge.s32.totalorder %s864_s27, 4   ;;  %s1210_s21 = smov %s791_s22 }
  0x62   : > { %s1211_s22 = smov %s795_s23  ;;  %s1212_s23 = smov %s875_s30 }
  0x63   : > { %s1213_s24 = smov %s864_s27  ;;  %18 = sbr.rel (!%p16_p2) target bundleno = 3 (0x3), region = 82 }
  0x68   :  { %626 = vsyncpa [#allocation3], 1 }
  0x69   :  { %628 = vsyncpa [#allocation3 + $0x1], 1 }

</bundles_post_ra>
